<compile_context>
chip_gen: v7x
topology: tpu7x:2x2x1
jax: 0.10.0
libtpu: 0.0.40
codegen_flags: <defaults>
</compile_context>

<pallas_src>
import functools

import jax
import jax.numpy as jnp
from jax.experimental import pallas as pl
from jax.experimental.pallas import tpu as pltpu


# ----------------------------- Pallas kernel --------------------------------
def dcnv2_kernel(
    x_ref,                                   # (TILE_B, D) f32 features
    uv1_ref, uv2_ref,                        # (D, D)      precomputed U@V per cross layer
    w1_ref, b1_ref, w2_ref, b2_ref,          # deep net (eval-BN folded)
    whx_ref, whh_ref, bh_ref,                # fused task-head layer 1 ([xl | h] split)
    wo_ref, bo_ref,                          # fused block-diagonal head layer 2
    out_ref,                                 # (TILE_B, 2) packed [click, purchase]
    *, matmul_dtype,
):
    f32 = jnp.float32

    def mm(a, w_ref):
        # MXU matmul: operands in matmul_dtype (bf16 on v6e/v7x), f32 accumulate.
        return jnp.dot(a.astype(matmul_dtype), w_ref[...],
                       preferred_element_type=f32)

    x0 = x_ref[...]                          # f32

    # ---- CrossNetV2 stack: xl = x0 * (xl @ (U@V)) + xl  (elementwise in f32) ----
    xl = x0
    for uv_ref in (uv1_ref, uv2_ref):
        xl = x0 * mm(xl, uv_ref) + xl

    # ---- DeepNetwork: Linear(+folded eval-BN) -> ReLU, twice ----
    h = jnp.maximum(mm(x0, w1_ref) + b1_ref[...], 0.0)
    h = jnp.maximum(mm(h, w2_ref) + b2_ref[...], 0.0)

    # ---- Fused task heads on combined = [xl, h] (split matmul, packed N=2*T1) ----
    t = jnp.maximum(mm(xl, whx_ref) + mm(h, whh_ref) + bh_ref[...], 0.0)
    logits = mm(t, wo_ref) + bo_ref[...]     # (TILE_B, 2) via block-diagonal Wo
    out_ref[...] = jax.nn.sigmoid(logits)


# ------------------------------ JAX wrapper ----------------------------------
def dcnv2_forward(x, fused_params, *, tile_b=256, matmul_dtype=jnp.bfloat16):
    """x: (B, D) f32 concatenated features. Returns dict of (B, 1) scores."""
    UV1, UV2, W1, b1, W2, b2, Whx, Whh, bh, Wo, bo = fused_params
    B, D = x.shape
    H1, H2, TH = W1.shape[1], W2.shape[1], Whx.shape[1]

    n_tiles = pl.cdiv(B, tile_b)
    Bp = n_tiles * tile_b
    xp = jnp.pad(x, ((0, Bp - B), (0, 0))) if Bp != B else x

    cast = lambda w: w.astype(matmul_dtype)
    f32 = lambda w: w.astype(jnp.float32)
    weights = (cast(UV1), cast(UV2),
               cast(W1), f32(b1), cast(W2), f32(b2),
               cast(Whx), cast(Whh), f32(bh),
               cast(Wo), f32(bo))

    def const_spec(w):
        # Full-extent block, constant index map -> stays VMEM-resident, no re-DMA.
        return pl.BlockSpec(w.shape, lambda i: (0, 0))

    in_specs = ([pl.BlockSpec((tile_b, D), lambda i: (i, 0))] +
                [const_spec(w) for w in weights])
    out_spec = pl.BlockSpec((tile_b, 2), lambda i: (i, 0))

    flops = 2 * Bp * (2 * D * D + D * H1 + H1 * H2 + (D + H2) * TH + TH * 2)
    bytes_accessed = int(Bp * D * 4 + Bp * 2 * 4 +
                         sum(int(w.size) * w.dtype.itemsize for w in weights))

    out = pl.pallas_call(
        functools.partial(dcnv2_kernel, matmul_dtype=matmul_dtype),
        out_shape=jax.ShapeDtypeStruct((Bp, 2), jnp.float32),
        grid_spec=pltpu.PrefetchScalarGridSpec(
            num_scalar_prefetch=0,
            grid=(n_tiles,),
            in_specs=in_specs,
            out_specs=out_spec,
        ),
        compiler_params=pltpu.CompilerParams(
            dimension_semantics=("parallel",)),
        cost_estimate=pl.CostEstimate(flops=int(flops),
                                      transcendentals=int(2 * Bp),
                                      bytes_accessed=bytes_accessed),
    )(xp, *weights)

    out = out[:B]
    return {"click": out[:, 0:1], "purchase": out[:, 1:2]}


# --------------------------- parameter construction ---------------------------
def xavier_uniform(key, shape):
    fan_in, fan_out = shape
    limit = (6.0 / (fan_in + fan_out)) ** 0.5
    return jax.random.uniform(key, shape, jnp.float32, -limit, limit)


def linear_params(key, in_dim, out_dim):
    # PyTorch nn.Linear default init: U(-1/sqrt(fan_in), 1/sqrt(fan_in))
    kw, kb = jax.random.split(key)
    bound = 1.0 / (in_dim ** 0.5)
    w = jax.random.uniform(kw, (in_dim, out_dim), jnp.float32, -bound, bound)
    b = jax.random.uniform(kb, (1, out_dim), jnp.float32, -bound, bound)
    return w, b


def build_raw_params(key, input_dim, hidden_layers, task_hidden):
    keys = jax.random.split(key, 10)
    D = input_dim
    H1, H2 = hidden_layers
    T1 = task_hidden

    # Cross layers (2 layers, xavier_uniform like the PyTorch module)
    U1 = xavier_uniform(keys[0], (D, D))
    V1 = xavier_uniform(keys[1], (D, D))
    U2 = xavier_uniform(keys[2], (D, D))
    V2 = xavier_uniform(keys[3], (D, D))

    # Deep network with eval-mode BatchNorm (init stats) folded in:
    # BN(y) = gamma*(y-mean)/sqrt(var+eps)+beta ; init stats -> scale 1/sqrt(1+eps)
    bn_scale = 1.0 / jnp.sqrt(jnp.float32(1.0 + 1e-5))
    W1, b1 = linear_params(keys[4], D, H1)
    W2, b2 = linear_params(keys[5], H1, H2)
    W1, b1, W2, b2 = W1 * bn_scale, b1 * bn_scale, W2 * bn_scale, b2 * bn_scale

    # Task heads (combined dim = D + H2)
    C = D + H2
    Wc1, bc1 = linear_params(keys[6], C, T1)
    Wc2, bc2 = linear_params(keys[7], T1, 1)
    Wp1, bp1 = linear_params(keys[8], C, T1)
    Wp2, bp2 = linear_params(keys[9], T1, 1)
    return (U1, V1, U2, V2, W1, b1, W2, b2,
            Wc1, bc1, Wc2, bc2, Wp1, bp1, Wp2, bp2)


def fuse_params(raw):
    """Precompute U@V and pack the two task heads into one lane-dense head."""
    (U1, V1, U2, V2, W1, b1, W2, b2,
     Wc1, bc1, Wc2, bc2, Wp1, bp1, Wp2, bp2) = raw
    D = U1.shape[0]
    T1 = Wc2.shape[0]

    UV1 = U1 @ V1
    UV2 = U2 @ V2

    # Fused head layer 1, split into [xl | deep] halves (avoids in-kernel concat).
    Whx = jnp.concatenate([Wc1[:D], Wp1[:D]], axis=1)     # (D,  2*T1)
    Whh = jnp.concatenate([Wc1[D:], Wp1[D:]], axis=1)     # (H2, 2*T1)
    bh = jnp.concatenate([bc1, bp1], axis=1)              # (1,  2*T1)

    # Fused head layer 2: block-diagonal (2*T1, 2) -> packed (B, 2) logits.
    Wo = jnp.zeros((2 * T1, 2), jnp.float32)
    Wo = Wo.at[:T1, 0:1].set(Wc2).at[T1:, 1:2].set(Wp2)
    bo = jnp.concatenate([bc2, bp2], axis=1)              # (1, 2)

    return (UV1, UV2, W1, b1, W2, b2, Whx, Whh, bh, Wo, bo)


# ------------------------------ pure-JAX reference ----------------------------
def dcnv2_reference(x, raw):
    (U1, V1, U2, V2, W1, b1, W2, b2,
     Wc1, bc1, Wc2, bc2, Wp1, bp1, Wp2, bp2) = raw
    with jax.default_matmul_precision("float32"):
        x0 = x
        xl = x
        for U, V in ((U1, V1), (U2, V2)):
            xl = x0 * ((xl @ U) @ V) + xl
        h = jnp.maximum(x0 @ W1 + b1, 0.0)
        h = jnp.maximum(h @ W2 + b2, 0.0)
        combined = jnp.concatenate([xl, h], axis=1)

        def head(Wt1, bt1, Wt2, bt2):
            t = jnp.maximum(combined @ Wt1 + bt1, 0.0)
            return jax.nn.sigmoid(t @ Wt2 + bt2)

        return {"click": head(Wc1, bc1, Wc2, bc2),
                "purchase": head(Wp1, bp1, Wp2, bp2)}


# ----------------------------------- main -------------------------------------
if __name__ == "__main__":
    key = jax.random.PRNGKey(0)
    k_feat, k_params = jax.random.split(key)

    # Two enabled 'pretrained_embedding' features of dim 64 each.
    # B deliberately not a multiple of tile_b to exercise wrapper padding + 2+ grid steps.
    B = 500
    feat_a = jax.random.normal(jax.random.fold_in(k_feat, 0), (B, 64), jnp.float32)
    feat_b = jax.random.normal(jax.random.fold_in(k_feat, 1), (B, 64), jnp.float32)
    x = jnp.concatenate([feat_a, feat_b], axis=1)          # (B, 128) — glue concat
    D = x.shape[1]

    hidden_layers = (128, 64)   # dcn_config['hidden_layers']
    task_hidden = 64            # dcn_config['task_hidden_layers'][0]

    raw_params = build_raw_params(k_params, D, hidden_layers, task_hidden)
    fused_params = fuse_params(raw_params)
    ref = dcnv2_reference(x, raw_params)

    # f32 MXU-operand path (tight structural check).
    fwd_f32 = jax.jit(functools.partial(dcnv2_forward,
                                        tile_b=128, matmul_dtype=jnp.float32))
    preds_f32 = fwd_f32(x, fused_params)
    jax.block_until_ready(preds_f32)

    # bf16 MXU-operand path (recommended perf config on v6e/v7x).
    fwd_bf16 = jax.jit(functools.partial(dcnv2_forward,
                                         tile_b=256, matmul_dtype=jnp.bfloat16))
    preds_bf16 = fwd_bf16(x, fused_params)
    jax.block_until_ready(preds_bf16)

    for task in ("click", "purchase"):
        assert preds_f32[task].shape == (B, 1)
        assert preds_bf16[task].shape == (B, 1)
        assert jnp.allclose(preds_f32[task], ref[task], atol=2e-2, rtol=2e-2), task
        assert jnp.allclose(preds_bf16[task], ref[task], atol=5e-2, rtol=5e-2), task

    print("KERNEL_OK")
</pallas_src>

<mosaic_0001>
module attributes {stable_mosaic.version = 11 : i64} {
  func.func @dcnv2_kernel(%arg0: i32, %arg1: memref<128x128xf32, #tpu.memory_space<vmem>>, %arg2: memref<128x128xf32, #tpu.memory_space<vmem>>, %arg3: memref<128x128xf32, #tpu.memory_space<vmem>>, %arg4: memref<128x128xf32, #tpu.memory_space<vmem>>, %arg5: memref<1x128xf32, #tpu.memory_space<vmem>>, %arg6: memref<128x64xf32, #tpu.memory_space<vmem>>, %arg7: memref<1x64xf32, #tpu.memory_space<vmem>>, %arg8: memref<128x128xf32, #tpu.memory_space<vmem>>, %arg9: memref<64x128xf32, #tpu.memory_space<vmem>>, %arg10: memref<1x128xf32, #tpu.memory_space<vmem>>, %arg11: memref<128x2xf32, #tpu.memory_space<vmem>>, %arg12: memref<1x2xf32, #tpu.memory_space<vmem>>, %arg13: memref<128x2xf32, #tpu.memory_space<vmem>>) attributes {dimension_semantics = [#tpu.dimension_semantics<parallel>], iteration_bounds = array<i64: 4>, scalar_prefetch = 0 : i64, scratch_operands = 0 : i64, tpu.core_type = #tpu.core_type<tc>, window_params = [{transform_indices = @transform_0, window_bounds = array<i64: 128, 128>}, {pipeline_mode = #tpu.pipeline_mode<synchronous>, transform_indices = @transform_1, window_bounds = array<i64: 128, 128>}, {pipeline_mode = #tpu.pipeline_mode<synchronous>, transform_indices = @transform_2, window_bounds = array<i64: 128, 128>}, {pipeline_mode = #tpu.pipeline_mode<synchronous>, transform_indices = @transform_3, window_bounds = array<i64: 128, 128>}, {pipeline_mode = #tpu.pipeline_mode<synchronous>, transform_indices = @transform_4, window_bounds = array<i64: 1, 128>}, {pipeline_mode = #tpu.pipeline_mode<synchronous>, transform_indices = @transform_5, window_bounds = array<i64: 128, 64>}, {pipeline_mode = #tpu.pipeline_mode<synchronous>, transform_indices = @transform_6, window_bounds = array<i64: 1, 64>}, {pipeline_mode = #tpu.pipeline_mode<synchronous>, transform_indices = @transform_7, window_bounds = array<i64: 128, 128>}, {pipeline_mode = #tpu.pipeline_mode<synchronous>, transform_indices = @transform_8, window_bounds = array<i64: 64, 128>}, {pipeline_mode = #tpu.pipeline_mode<synchronous>, transform_indices = @transform_9, window_bounds = array<i64: 1, 128>}, {pipeline_mode = #tpu.pipeline_mode<synchronous>, transform_indices = @transform_10, window_bounds = array<i64: 128, 2>}, {pipeline_mode = #tpu.pipeline_mode<synchronous>, transform_indices = @transform_11, window_bounds = array<i64: 1, 2>}, {transform_indices = @transform_12, window_bounds = array<i64: 128, 2>}]} {
    %c0 = arith.constant 0 : index
    %c0_0 = arith.constant 0 : index
    %0 = vector.load %arg1[%c0, %c0_0] : memref<128x128xf32, #tpu.memory_space<vmem>>, vector<128x128xf32>
    %c0_1 = arith.constant 0 : index
    %c0_2 = arith.constant 0 : index
    %1 = vector.load %arg2[%c0_1, %c0_2] : memref<128x128xf32, #tpu.memory_space<vmem>>, vector<128x128xf32>
    %cst = arith.constant dense<0.000000e+00> : vector<128x128xf32>
    %2 = tpu.matmul %0, %1, %cst {dimension_numbers = #tpu.dot_dimension_numbers<[1], [0], [0], [1], [0, 0, 1, 1], [], []>} : vector<128x128xf32>, vector<128x128xf32>, vector<128x128xf32> -> vector<128x128xf32>
    %3 = arith.mulf %0, %2 : vector<128x128xf32>
    %4 = arith.addf %3, %0 : vector<128x128xf32>
    %c0_3 = arith.constant 0 : index
    %c0_4 = arith.constant 0 : index
    %5 = vector.load %arg3[%c0_3, %c0_4] : memref<128x128xf32, #tpu.memory_space<vmem>>, vector<128x128xf32>
    %cst_5 = arith.constant dense<0.000000e+00> : vector<128x128xf32>
    %6 = tpu.matmul %4, %5, %cst_5 {dimension_numbers = #tpu.dot_dimension_numbers<[1], [0], [0], [1], [0, 0, 1, 1], [], []>} : vector<128x128xf32>, vector<128x128xf32>, vector<128x128xf32> -> vector<128x128xf32>
    %7 = arith.mulf %0, %6 : vector<128x128xf32>
    %8 = arith.addf %7, %4 : vector<128x128xf32>
    %c0_6 = arith.constant 0 : index
    %c0_7 = arith.constant 0 : index
    %9 = vector.load %arg4[%c0_6, %c0_7] : memref<128x128xf32, #tpu.memory_space<vmem>>, vector<128x128xf32>
    %cst_8 = arith.constant dense<0.000000e+00> : vector<128x128xf32>
    %10 = tpu.matmul %0, %9, %cst_8 {dimension_numbers = #tpu.dot_dimension_numbers<[1], [0], [0], [1], [0, 0, 1, 1], [], []>} : vector<128x128xf32>, vector<128x128xf32>, vector<128x128xf32> -> vector<128x128xf32>
    %c0_9 = arith.constant 0 : index
    %c0_10 = arith.constant 0 : index
    %11 = vector.load %arg5[%c0_9, %c0_10] : memref<1x128xf32, #tpu.memory_space<vmem>>, vector<1x128xf32>
    %12 = vector.broadcast %11 : vector<1x128xf32> to vector<128x128xf32>
    %13 = arith.addf %10, %12 : vector<128x128xf32>
    %cst_11 = arith.constant 0.000000e+00 : f32
    %14 = vector.broadcast %cst_11 : f32 to vector<128x128xf32>
    %15 = arith.maximumf %13, %14 : vector<128x128xf32>
    %c0_12 = arith.constant 0 : index
    %c0_13 = arith.constant 0 : index
    %16 = vector.load %arg6[%c0_12, %c0_13] : memref<128x64xf32, #tpu.memory_space<vmem>>, vector<128x64xf32>
    %cst_14 = arith.constant dense<0.000000e+00> : vector<128x64xf32>
    %17 = tpu.matmul %15, %16, %cst_14 {dimension_numbers = #tpu.dot_dimension_numbers<[1], [0], [0], [1], [0, 0, 1, 1], [], []>} : vector<128x128xf32>, vector<128x64xf32>, vector<128x64xf32> -> vector<128x64xf32>
    %c0_15 = arith.constant 0 : index
    %c0_16 = arith.constant 0 : index
    %18 = vector.load %arg7[%c0_15, %c0_16] : memref<1x64xf32, #tpu.memory_space<vmem>>, vector<1x64xf32>
    %19 = vector.broadcast %18 : vector<1x64xf32> to vector<128x64xf32>
    %20 = arith.addf %17, %19 : vector<128x64xf32>
    %cst_17 = arith.constant 0.000000e+00 : f32
    %21 = vector.broadcast %cst_17 : f32 to vector<128x64xf32>
    %22 = arith.maximumf %20, %21 : vector<128x64xf32>
    %c0_18 = arith.constant 0 : index
    %c0_19 = arith.constant 0 : index
    %23 = vector.load %arg8[%c0_18, %c0_19] : memref<128x128xf32, #tpu.memory_space<vmem>>, vector<128x128xf32>
    %cst_20 = arith.constant dense<0.000000e+00> : vector<128x128xf32>
    %24 = tpu.matmul %8, %23, %cst_20 {dimension_numbers = #tpu.dot_dimension_numbers<[1], [0], [0], [1], [0, 0, 1, 1], [], []>} : vector<128x128xf32>, vector<128x128xf32>, vector<128x128xf32> -> vector<128x128xf32>
    %c0_21 = arith.constant 0 : index
    %c0_22 = arith.constant 0 : index
    %25 = vector.load %arg9[%c0_21, %c0_22] : memref<64x128xf32, #tpu.memory_space<vmem>>, vector<64x128xf32>
    %cst_23 = arith.constant dense<0.000000e+00> : vector<128x128xf32>
    %26 = tpu.matmul %22, %25, %cst_23 {dimension_numbers = #tpu.dot_dimension_numbers<[1], [0], [0], [1], [0, 0, 1, 1], [], []>} : vector<128x64xf32>, vector<64x128xf32>, vector<128x128xf32> -> vector<128x128xf32>
    %27 = arith.addf %24, %26 : vector<128x128xf32>
    %c0_24 = arith.constant 0 : index
    %c0_25 = arith.constant 0 : index
    %28 = vector.load %arg10[%c0_24, %c0_25] : memref<1x128xf32, #tpu.memory_space<vmem>>, vector<1x128xf32>
    %29 = vector.broadcast %28 : vector<1x128xf32> to vector<128x128xf32>
    %30 = arith.addf %27, %29 : vector<128x128xf32>
    %cst_26 = arith.constant 0.000000e+00 : f32
    %31 = vector.broadcast %cst_26 : f32 to vector<128x128xf32>
    %32 = arith.maximumf %30, %31 : vector<128x128xf32>
    %c0_27 = arith.constant 0 : index
    %c0_28 = arith.constant 0 : index
    %33 = vector.load %arg11[%c0_27, %c0_28] : memref<128x2xf32, #tpu.memory_space<vmem>>, vector<128x2xf32>
    %cst_29 = arith.constant dense<0.000000e+00> : vector<128x2xf32>
    %34 = tpu.matmul %32, %33, %cst_29 {dimension_numbers = #tpu.dot_dimension_numbers<[1], [0], [0], [1], [0, 0, 1, 1], [], []>} : vector<128x128xf32>, vector<128x2xf32>, vector<128x2xf32> -> vector<128x2xf32>
    %c0_30 = arith.constant 0 : index
    %c0_31 = arith.constant 0 : index
    %35 = vector.load %arg12[%c0_30, %c0_31] : memref<1x2xf32, #tpu.memory_space<vmem>>, vector<1x2xf32>
    %36 = vector.broadcast %35 : vector<1x2xf32> to vector<128x2xf32>
    %37 = arith.addf %34, %36 : vector<128x2xf32>
    %38 = arith.negf %37 : vector<128x2xf32>
    %39 = math.exp %38 : vector<128x2xf32>
    %cst_32 = arith.constant 1.000000e+00 : f32
    %40 = vector.broadcast %cst_32 : f32 to vector<128x2xf32>
    %41 = arith.addf %40, %39 : vector<128x2xf32>
    %42 = arith.divf %40, %41 : vector<128x2xf32>
    %c0_33 = arith.constant 0 : index
    %c0_34 = arith.constant 0 : index
    %43 = vector.load %arg13[%c0_33, %c0_34] : memref<128x2xf32, #tpu.memory_space<vmem>>, vector<128x2xf32>
    tpu.vector_store %arg13[%c0_33, %c0_34], %42 {strides = array<i32>} : memref<128x2xf32, #tpu.memory_space<vmem>>, vector<128x2xf32>,
    return
  }
  func.func @transform_0(%arg0: i32) -> (i32, i32) {
    %c0_i32 = arith.constant 0 : i32
    %c0_i32_0 = arith.constant 0 : i32
    return %arg0, %c0_i32 : i32, i32
  }
  func.func @transform_1(%arg0: i32) -> (i32, i32) {
    %c0_i32 = arith.constant 0 : i32
    %c0_i32_0 = arith.constant 0 : i32
    %c0_i32_1 = arith.constant 0 : i32
    return %c0_i32, %c0_i32_0 : i32, i32
  }
  func.func @transform_2(%arg0: i32) -> (i32, i32) {
    %c0_i32 = arith.constant 0 : i32
    %c0_i32_0 = arith.constant 0 : i32
    %c0_i32_1 = arith.constant 0 : i32
    return %c0_i32, %c0_i32_0 : i32, i32
  }
  func.func @transform_3(%arg0: i32) -> (i32, i32) {
    %c0_i32 = arith.constant 0 : i32
    %c0_i32_0 = arith.constant 0 : i32
    %c0_i32_1 = arith.constant 0 : i32
    return %c0_i32, %c0_i32_0 : i32, i32
  }
  func.func @transform_4(%arg0: i32) -> (i32, i32) {
    %c0_i32 = arith.constant 0 : i32
    %c0_i32_0 = arith.constant 0 : i32
    %c0_i32_1 = arith.constant 0 : i32
    return %c0_i32, %c0_i32_0 : i32, i32
  }
  func.func @transform_5(%arg0: i32) -> (i32, i32) {
    %c0_i32 = arith.constant 0 : i32
    %c0_i32_0 = arith.constant 0 : i32
    %c0_i32_1 = arith.constant 0 : i32
    return %c0_i32, %c0_i32_0 : i32, i32
  }
  func.func @transform_6(%arg0: i32) -> (i32, i32) {
    %c0_i32 = arith.constant 0 : i32
    %c0_i32_0 = arith.constant 0 : i32
    %c0_i32_1 = arith.constant 0 : i32
    return %c0_i32, %c0_i32_0 : i32, i32
  }
  func.func @transform_7(%arg0: i32) -> (i32, i32) {
    %c0_i32 = arith.constant 0 : i32
    %c0_i32_0 = arith.constant 0 : i32
    %c0_i32_1 = arith.constant 0 : i32
    return %c0_i32, %c0_i32_0 : i32, i32
  }
  func.func @transform_8(%arg0: i32) -> (i32, i32) {
    %c0_i32 = arith.constant 0 : i32
    %c0_i32_0 = arith.constant 0 : i32
    %c0_i32_1 = arith.constant 0 : i32
    return %c0_i32, %c0_i32_0 : i32, i32
  }
  func.func @transform_9(%arg0: i32) -> (i32, i32) {
    %c0_i32 = arith.constant 0 : i32
    %c0_i32_0 = arith.constant 0 : i32
    %c0_i32_1 = arith.constant 0 : i32
    return %c0_i32, %c0_i32_0 : i32, i32
  }
  func.func @transform_10(%arg0: i32) -> (i32, i32) {
    %c0_i32 = arith.constant 0 : i32
    %c0_i32_0 = arith.constant 0 : i32
    %c0_i32_1 = arith.constant 0 : i32
    return %c0_i32, %c0_i32_0 : i32, i32
  }
  func.func @transform_11(%arg0: i32) -> (i32, i32) {
    %c0_i32 = arith.constant 0 : i32
    %c0_i32_0 = arith.constant 0 : i32
    %c0_i32_1 = arith.constant 0 : i32
    return %c0_i32, %c0_i32_0 : i32, i32
  }
  func.func @transform_12(%arg0: i32) -> (i32, i32) {
    %c0_i32 = arith.constant 0 : i32
    %c0_i32_0 = arith.constant 0 : i32
    return %arg0, %c0_i32 : i32, i32
  }
}

</mosaic_0001>

<bundles_post_ra>
// kernel: dcnv2_forward.1
= control target key start
LH: loop header
LB: loop body
LE: loop exit
PB: predicated region body
PF: predicated region fallthrough
CT: control target
= control target key end

     0   :  { %s2934_s21 = smov 0   ;;  %s3632_s0 = inlined_call_operand.vmem [shape: f32[512,128], index: 0, kind: input, shape index: {}]   ;;  %s3633_s1 = inlined_call_operand.vmem [shape: f32[128,128], index: 1, kind: input, shape index: {}]   ;;  %s3634_s2 = inlined_call_operand.vmem [shape: f32[128,128], index: 2, kind: input, shape index: {}]   ;;  %s3635_s3 = inlined_call_operand.vmem [shape: f32[128,128], index: 3, kind: input, shape index: {}]   ;;  %s3636_s4 = inlined_call_operand.vmem [shape: f32[1,128], index: 4, kind: input, shape index: {}]   ;;  %s3637_s5 = inlined_call_operand.vmem [shape: f32[128,64], index: 5, kind: input, shape index: {}]   ;;  %s3638_s6 = inlined_call_operand.vmem [shape: f32[1,64], index: 6, kind: input, shape index: {}]   ;;  %s3639_s7 = inlined_call_operand.vmem [shape: f32[128,128], index: 7, kind: input, shape index: {}]   ;;  %s3640_s8 = inlined_call_operand.vmem [shape: f32[64,128], index: 8, kind: input, shape index: {}]   ;;  %s3641_s9 = inlined_call_operand.vmem [shape: f32[1,128], index: 9, kind: input, shape index: {}]   ;;  %s3642_s10 = inlined_call_operand.vmem [shape: f32[128,2], index: 10, kind: input, shape index: {}]   ;;  %s3643_s11 = inlined_call_operand.vmem [shape: f32[1,2], index: 11, kind: input, shape index: {}]   ;;  %s3644_s12 = inlined_call_operand.vmem [shape: f32[512,2], index: 12, kind: output, shape index: {}]  }
   0x1 LB: > { %s1926_s22 = sadd.s32 4294967295, %s2867_s21   ;;  %p1930_p0 = scmp.ge.s32.totalorder %s2867_s21, 1  ;;  %s2867_s21 = sphi %s2934_s21, %s22_s21  }
   0x2   : > { %p363_p1 = scmp.lt.s32.totalorder %s2867_s21, 5 }
   0x4   : > { %p364_p2 = pnand %p1930_p0, %p363_p1 }
   0x6   : > { %367 = sbr.rel (%p364_p2) target bundleno = 1038 (0x40e), region = 68 }
   0xd   : > { %v433_v0 = vld [vmem:[%s3633_s1] sm:$0xff]  ;;  %v434_v1 = vld [vmem:[%s3633_s1 + $0x8] sm:$0xff]  ;;  %v435_v2 = vld [vmem:[%s3633_s1 + $0x10] sm:$0xff]  ;;  %s1931_s29 = sshll.u32 %s1926_s22, 4  ;;  %vm1211_vm0 = vcmask 523264   ;;  %vm1853_vm1 = vcmask 15360  }
   0xe   : > { %v2565_v3 = vpack.c.bf16 %v434_v1, %v433_v0  ;;  %v436_v4 = vld [vmem:[%s3633_s1 + $0x18] sm:$0xff]  ;;  %p406_p3 = scmp.lt.s32.totalorder %s1931_s29, 63  ;;  %v437_v6 = vld [vmem:[%s3633_s1 + $0x20] sm:$0xff]  ;;  %v438_v7 = vld [vmem:[%s3633_s1 + $0x28] sm:$0xff] }
   0xf   : > { %v2569_v5 = vpack.c.bf16 %v436_v4, %v435_v2  ;;  %v2573_v8 = vpack.c.bf16 %v438_v7, %v437_v6  ;;  %v439_v9 = vld [vmem:[%s3633_s1 + $0x30] sm:$0xff]  ;;  %v440_v10 = vld [vmem:[%s3633_s1 + $0x38] sm:$0xff]  ;;  %v441_v13 = vld [vmem:[%s3633_s1 + $0x40] sm:$0xff] }
  0x10   : > { %2566 = vmatprep.subr.bf16.mxu0 %v2565_v3  ;;  %s3649_s29 = smov (!%p406_p3, %s1931_s29), 63  ;;  %v2577_v12 = vpack.c.bf16 %v440_v10, %v439_v9  ;;  %v442_v14 = vld [vmem:[%s3633_s1 + $0x48] sm:$0xff]  ;;  %v443_v16 = vld [vmem:[%s3633_s1 + $0x50] sm:$0xff]  ;;  %v444_v17 = vld [vmem:[%s3633_s1 + $0x58] sm:$0xff] }
  0x11   : > { %2568 = vmatpush3.bf16.msra.mxu0 %v2565_v3  ;;  %s1932_s18 = sshll.u32 %s3649_s29, 3  ;;  %v2581_v15 = vpack.c.bf16 %v442_v14, %v441_v13  ;;  %v626_v18 = vld [vmem:[%s3634_s2] sm:$0xff]  ;;  %v627_v19 = vld [vmem:[%s3634_s2 + $0x8] sm:$0xff]  ;;  %v628_v20 = vld [vmem:[%s3634_s2 + $0x10] sm:$0xff]  ;;  %v2585_v21 = vpack.c.bf16 %v444_v17, %v443_v16 }
  0x12   : > { %2570 = vmatprep.subr.bf16.mxu0 %v2569_v5  ;;  %s2974_s26 = scalar_lea.vmem %s3632_s0, %s1932_s18  ;;  %v445_v22 = vld [vmem:[%s3633_s1 + $0x60] sm:$0xff]  ;;  %v2597_v23 = vpack.c.bf16 %v627_v19, %v626_v18  ;;  %v629_v24 = vld [vmem:[%s3634_s2 + $0x18] sm:$0xff]  ;;  %v446_v25 = vld [vmem:[%s3633_s1 + $0x68] sm:$0xff]  ;;  %s3592_s23 = scalar_lea.vmem %s3644_s12, %s1932_s18 }
  0x13   : > { %v2977_v11 = vld [vmem:[%s2974_s26] sm:$0xff]  ;;  %v2601_v26 = vpack.c.bf16 %v629_v24, %v628_v20  ;;  %v631_v28 = vld [vmem:[%s3634_s2 + $0x28] sm:$0xff]  ;;  %v2589_v29 = vpack.c.bf16 %v446_v25, %v445_v22  ;;  %v447_v30 = vld [vmem:[%s3633_s1 + $0x70] sm:$0xff] }
  0x14   : > { %2221 = vmatprep.mubr.f32.mxu0 %v2977_v11  ;;  %v630_v27 = vld [vmem:[%s3634_s2 + $0x20] sm:$0xff]  ;;  %2598 = vmatprep.subr.bf16.mxu1 %v2597_v23  ;;  %v448_v32 = vld [vmem:[%s3633_s1 + $0x78] sm:$0xff]  ;;  %v632_v33 = vld [vmem:[%s3634_s2 + $0x30] sm:$0xff] }
  0x15   : > { %2572 = vmatpush3.bf16.msra.mxu0 %v2569_v5  ;;  %2600 = vmatpush3.bf16.msra.mxu1 %v2597_v23  ;;  %v2605_v31 = vpack.c.bf16 %v631_v28, %v630_v27  ;;  %v633_v34 = vld [vmem:[%s3634_s2 + $0x38] sm:$0xff]  ;;  %v2593_v35 = vpack.c.bf16 %v448_v32, %v447_v30  ;;  %v819_v36 = vld [vmem:[%s3635_s3] sm:$0xff]  ;;  %v820_v38 = vld [vmem:[%s3635_s3 + $0x8] sm:$0xff] }
  0x16   : > { %2574 = vmatprep.subr.bf16.mxu0 %v2573_v8  ;;  %2602 = vmatprep.subr.bf16.mxu1 %v2601_v26  ;;  %v2609_v37 = vpack.c.bf16 %v633_v34, %v632_v33  ;;  %v634_v39 = vld [vmem:[%s3634_s2 + $0x40] sm:$0xff]  ;;  %v635_v40 = vld [vmem:[%s3634_s2 + $0x48] sm:$0xff]  ;;  %v2629_v41 = vpack.c.bf16 %v820_v38, %v819_v36  ;;  %v821_v43 = vld [vmem:[%s3635_s3 + $0x10] sm:$0xff] }
  0x17   : > { %v2613_v42 = vpack.c.bf16 %v635_v40, %v634_v39  ;;  %v822_v44 = vld [vmem:[%s3635_s3 + $0x18] sm:$0xff]  ;;  %v636_v45 = vld [vmem:[%s3634_s2 + $0x50] sm:$0xff]  ;;  %v3053_v47 = vld [vmem:[%s2974_s26 + $0x8] sm:$0xff] }
  0x18   : > { %v637_v46 = vld [vmem:[%s3634_s2 + $0x58] sm:$0xff]  ;;  %v3056_v48 = vld [vmem:[%s2974_s26 + $0x10] sm:$0xff]  ;;  %v2633_v49 = vpack.c.bf16 %v822_v44, %v821_v43  ;;  %v823_v50 = vld [vmem:[%s3635_s3 + $0x20] sm:$0xff] }
  0x19   : > { %2576 = vmatpush3.bf16.msra.mxu0 %v2573_v8  ;;  %2604 = vmatpush3.bf16.msra.mxu1 %v2601_v26  ;;  %v824_v51 = vld [vmem:[%s3635_s3 + $0x28] sm:$0xff]  ;;  %v2617_v52 = vpack.c.bf16 %v637_v46, %v636_v45  ;;  %v638_v53 = vld [vmem:[%s3634_s2 + $0x60] sm:$0xff]  ;;  %v3073_v55 = vld [vmem:[%s2974_s26 + $0x18] sm:$0xff] }
  0x1a   : > { %2578 = vmatprep.subr.bf16.mxu0 %v2577_v12  ;;  %2606 = vmatprep.subr.bf16.mxu1 %v2605_v31  ;;  %v639_v54 = vld [vmem:[%s3634_s2 + $0x68] sm:$0xff]  ;;  %v3076_v56 = vld [vmem:[%s2974_s26 + $0x20] sm:$0xff]  ;;  %v2637_v57 = vpack.c.bf16 %v824_v51, %v823_v50  ;;  %v825_v58 = vld [vmem:[%s3635_s3 + $0x30] sm:$0xff] }
  0x1b   : > { %v826_v59 = vld [vmem:[%s3635_s3 + $0x38] sm:$0xff]  ;;  %v2621_v60 = vpack.c.bf16 %v639_v54, %v638_v53  ;;  %v3087_v61 = vld [vmem:[%s2974_s26 + $0x28] sm:$0xff]  ;;  %v3090_v62 = vld [vmem:[%s2974_s26 + $0x30] sm:$0xff] }
  0x1c   : > { %v2641_v63 = vpack.c.bf16 %v826_v59, %v825_v58  ;;  %v827_v0 = vld [vmem:[%s3635_s3 + $0x40] sm:$0xff]  ;;  %v828_v1 = vld [vmem:[%s3635_s3 + $0x48] sm:$0xff]  ;;  %v3101_v2 = vld [vmem:[%s2974_s26 + $0x38] sm:$0xff] }
  0x1d   : > { %2580 = vmatpush3.bf16.msra.mxu0 %v2577_v12  ;;  %2608 = vmatpush3.bf16.msra.mxu1 %v2605_v31  ;;  %v3104_v3 = vld [vmem:[%s2974_s26 + $0x40] sm:$0xff]  ;;  %v2645_v4 = vpack.c.bf16 %v828_v1, %v827_v0  ;;  %v829_v5 = vld [vmem:[%s3635_s3 + $0x50] sm:$0xff]  ;;  %v830_v6 = vld [vmem:[%s3635_s3 + $0x58] sm:$0xff] }
  0x1e   : > { %2582 = vmatprep.subr.bf16.mxu0 %v2581_v15  ;;  %2610 = vmatprep.subr.bf16.mxu1 %v2609_v37  ;;  %v3115_v7 = vld [vmem:[%s2974_s26 + $0x48] sm:$0xff]  ;;  %v3118_v8 = vld [vmem:[%s2974_s26 + $0x50] sm:$0xff]  ;;  %v2649_v9 = vpack.c.bf16 %v830_v6, %v829_v5  ;;  %v831_v10 = vld [vmem:[%s3635_s3 + $0x60] sm:$0xff] }
  0x1f   : > { %v832_v12 = vld [vmem:[%s3635_s3 + $0x68] sm:$0xff]  ;;  %v3129_v13 = vld [vmem:[%s2974_s26 + $0x58] sm:$0xff]  ;;  %v3132_v14 = vld [vmem:[%s2974_s26 + $0x60] sm:$0xff] }
  0x20   : > { %v833_v16 = vld [vmem:[%s3635_s3 + $0x70] sm:$0xff]  ;;  %v834_v17 = vld [vmem:[%s3635_s3 + $0x78] sm:$0xff]  ;;  %v3143_v18 = vld [vmem:[%s2974_s26 + $0x68] sm:$0xff] }
  0x21   : > { %2584 = vmatpush3.bf16.msra.mxu0 %v2581_v15  ;;  %2612 = vmatpush3.bf16.msra.mxu1 %v2609_v37  ;;  %v2653_v15 = vpack.c.bf16 %v832_v12, %v831_v10  ;;  %v3146_v19 = vld [vmem:[%s2974_s26 + $0x70] sm:$0xff]  ;;  %v2657_v20 = vpack.c.bf16 %v834_v17, %v833_v16  ;;  %v641_v23 = vld [vmem:[%s3634_s2 + $0x78] sm:$0xff]  ;;  %v1003_v25 = vld [vmem:[%s3637_s5] sm:$0xff] }
  0x22   : > { %2586 = vmatprep.subr.bf16.mxu0 %v2585_v21  ;;  %2614 = vmatprep.subr.bf16.mxu1 %v2613_v42  ;;  %v640_v22 = vld [vmem:[%s3634_s2 + $0x70] sm:$0xff]  ;;  %v1004_v26 = vld [vmem:[%s3637_s5 + $0x8] sm:$0xff]  ;;  %v1006_v33 = vld [vmem:[%s3637_s5 + $0x18] sm:$0xff] }
  0x23   : > { %v2625_v24 = vpack.c.bf16 %v641_v23, %v640_v22  ;;  %v2661_v27 = vpack.c.bf16 %v1004_v26, %v1003_v25  ;;  %v1005_v32 = vld [vmem:[%s3637_s5 + $0x10] sm:$0xff]  ;;  %v1010_v53 = vld [vmem:[%s3637_s5 + $0x38] sm:$0xff]  ;;  %v1011_v1 = vld [vmem:[%s3637_s5 + $0x40] sm:$0xff] }
  0x24   : > { %v2665_v39 = vpack.c.bf16 %v1006_v33, %v1005_v32  ;;  %v1013_v17 = vld [vmem:[%s3637_s5 + $0x50] sm:$0xff] }
  0x25   : > { %2588 = vmatpush3.bf16.msra.mxu0 %v2585_v21  ;;  %2616 = vmatpush3.bf16.msra.mxu1 %v2613_v42  ;;  %v3151_v21 = vld [vmem:[%s2974_s26 + $0x78] sm:$0xff]  ;;  %v1008_v42 = vld [vmem:[%s3637_s5 + $0x28] sm:$0xff] }
  0x26   : > { %2590 = vmatprep.subr.bf16.mxu0 %v2589_v29  ;;  %2618 = vmatprep.subr.bf16.mxu1 %v2617_v52 }
  0x29   : > { %2592 = vmatpush3.bf16.msra.mxu0 %v2589_v29  ;;  %2620 = vmatpush3.bf16.msra.mxu1 %v2617_v52  ;;  %v1009_v52 = vld [vmem:[%s3637_s5 + $0x30] sm:$0xff] }
  0x2a   : > { %2594 = vmatprep.subr.bf16.mxu0 %v2593_v35  ;;  %2622 = vmatprep.subr.bf16.mxu1 %v2621_v60 }
  0x2d   : > { %2596 = vmatpush3.bf16.msra.mxu0 %v2593_v35  ;;  %2624 = vmatpush3.bf16.msra.mxu1 %v2621_v60 }
  0x2e   : > { %2630 = vmatprep.subr.bf16.mxu0 %v2629_v41  ;;  %2626 = vmatprep.subr.bf16.mxu1 %v2625_v24 }
  0x30   : > { %2222 = vmatmul.mubr.f32.vlgmr.msra.gmra.mrb[0].mxu0 %v3053_v47 }
  0x31   : > { %2632 = vmatpush3.bf16.msra.mxu0 %v2629_v41  ;;  %2224 = vmatprep.mubr.f32.mxu0 %v3056_v48  ;;  %v1007_v41 = vld [vmem:[%s3637_s5 + $0x20] sm:$0xff] }
  0x32   : > { %2634 = vmatprep.subr.bf16.mxu0 %v2633_v49  ;;  %2628 = vmatpush3.bf16.msra.mxu1 %v2625_v24  ;;  %v2669_v50 = vpack.c.bf16 %v1008_v42, %v1007_v41  ;;  %v1018_v41 = vld [vmem:[%s3637_s5 + $0x78] sm:$0xff] }
  0x33   : > { %2662 = vmatprep.subr.bf16.mxu1 %v2661_v27 }
  0x34   : > { %2225 = vmatmul.mubr.f32.gmra.mrb[2].mxu0 %v3073_v55 }
  0x35   : > { %2636 = vmatpush3.bf16.msra.mxu0 %v2633_v49  ;;  %2227 = vmatprep.mubr.f32.mxu0 %v3076_v56 }
  0x36   : > { %2638 = vmatprep.subr.bf16.mxu0 %v2637_v57 }
  0x38   : > { %2228 = vmatmul.mubr.f32.gmra.mrb[4].mxu0 %v3087_v61 }
  0x39   : > { %2640 = vmatpush3.bf16.msra.mxu0 %v2637_v57  ;;  %2230 = vmatprep.mubr.f32.mxu0 %v3090_v62 }
  0x3a   : > { %2642 = vmatprep.subr.bf16.mxu0 %v2641_v63 }
  0x3c   : > { %2231 = vmatmul.mubr.f32.gmra.mrb[6].mxu0 %v3101_v2 }
  0x3d   : > { %2644 = vmatpush3.bf16.msra.mxu0 %v2641_v63  ;;  %2233 = vmatprep.mubr.f32.mxu0 %v3104_v3  ;;  %v2673_v63 = vpack.c.bf16 %v1010_v53, %v1009_v52  ;;  %v3298_v53 = vld [vmem:[%s3636_s4] ss:$0 sm:$0xff] }
  0x3e   : > { %2646 = vmatprep.subr.bf16.mxu0 %v2645_v4 }
  0x40   : > { %2234 = vmatmul.mubr.f32.gmra.mrb[8].mxu0 %v3115_v7 }
  0x41   : > { %2648 = vmatpush3.bf16.msra.mxu0 %v2645_v4  ;;  %2236 = vmatprep.mubr.f32.mxu0 %v3118_v8  ;;  %v1012_v4 = vld [vmem:[%s3637_s5 + $0x48] sm:$0xff] }
  0x42   : > { %2650 = vmatprep.subr.bf16.mxu0 %v2649_v9 }
  0x44   : > { %2237 = vmatmul.mubr.f32.gmra.mrb[10].mxu0 %v3129_v13 }
  0x45   : > { %2652 = vmatpush3.bf16.msra.mxu0 %v2649_v9  ;;  %2239 = vmatprep.mubr.f32.mxu0 %v3132_v14 }
  0x46   : > { %2654 = vmatprep.subr.bf16.mxu0 %v2653_v15 }
  0x48   : > { %2240 = vmatmul.mubr.f32.gmra.mrb[12].mxu0 %v3143_v18 }
  0x49   : > { %2656 = vmatpush3.bf16.msra.mxu0 %v2653_v15  ;;  %2242 = vmatprep.mubr.f32.mxu0 %v3146_v19  ;;  %v2677_v15 = vpack.c.bf16 %v1012_v4, %v1011_v1 }
  0x4a   : > { %2658 = vmatprep.subr.bf16.mxu0 %v2657_v20 }
  0x4c   : > { %2243 = vmatmul.mubr.f32.gmra.mrb[14].mxu0 %v3151_v21 }
  0x4d   : > { %2660 = vmatpush3.bf16.msra.mxu0 %v2657_v20  ;;  %2333 = vmatprep.mubr.f32.mxu0 %v2977_v11  ;;  %v1014_v20 = vld [vmem:[%s3637_s5 + $0x58] sm:$0xff] }
  0x50   : > { %2334 = vmatmul.mubr.f32.vlgmr.msra.gmra.mrb[16].mxu0 %v3053_v47 }
  0x51   : > { %2336 = vmatprep.mubr.f32.mxu0 %v3056_v48 }
  0x54   : > { %2337 = vmatmul.mubr.f32.gmra.mrb[18].mxu0 %v3073_v55 }
  0x55   : > { %2339 = vmatprep.mubr.f32.mxu0 %v3076_v56 }
  0x58   : > { %2340 = vmatmul.mubr.f32.gmra.mrb[20].mxu0 %v3087_v61 }
  0x59   : > { %2342 = vmatprep.mubr.f32.mxu0 %v3090_v62 }
  0x5c   : > { %2343 = vmatmul.mubr.f32.gmra.mrb[22].mxu0 %v3101_v2 }
  0x5d   : > { %2345 = vmatprep.mubr.f32.mxu0 %v3104_v3 }
  0x60   : > { %2346 = vmatmul.mubr.f32.gmra.mrb[24].mxu0 %v3115_v7 }
  0x61   : > { %2348 = vmatprep.mubr.f32.mxu0 %v3118_v8 }
  0x64   : > { %2349 = vmatmul.mubr.f32.gmra.mrb[26].mxu0 %v3129_v13 }
  0x65   : > { %2351 = vmatprep.mubr.f32.mxu0 %v3132_v14 }
  0x68   : > { %2352 = vmatmul.mubr.f32.gmra.mrb[28].mxu0 %v3143_v18 }
  0x69   : > { %2354 = vmatprep.mubr.f32.mxu0 %v3146_v19 }
  0x6c   : > { %2355 = vmatmul.mubr.f32.gmra.mrb[30].mxu0 %v3151_v21 }
 0x103   : > { %v2223_v28 = vpop.f32.mrb[0].mxu0 }
 0x104   : > { %v595_v29 = vmul.f32 %v2223_v28, %v3053_v47  ;;  %v515_v30 = vpop.f32.mrb[1].mxu0 }
 0x105   : > { %v594_v31 = vmul.f32 %v515_v30, %v2977_v11  ;;  %v1016_v30 = vld [vmem:[%s3637_s5 + $0x68] sm:$0xff] }
 0x106   : > { %v3194_v36 = vadd.f32 %v595_v29, %v3053_v47  ;;  %v1015_v29 = vld [vmem:[%s3637_s5 + $0x60] sm:$0xff] }
 0x107   : > { %v2226_v34 = vpop.f32.mrb[2].mxu0  ;;  %v3191_v35 = vadd.f32 %v594_v31, %v2977_v11 }
 0x108   : > { %v597_v37 = vmul.f32 %v2226_v34, %v3073_v55  ;;  %v525_v38 = vpop.f32.mrb[3].mxu0 }
 0x109   : > { %v596_v40 = vmul.f32 %v525_v38, %v3056_v48  ;;  %2277 = vmatprep.mubr.f32.mxu1 %v3191_v35  ;;  %v2685_v38 = vpack.c.bf16 %v1016_v30, %v1015_v29 }
 0x10a   : > { %2278 = vmatmul.mubr.f32.vlgmr.msra.gmra.mrb[0].mxu1 %v3194_v36  ;;  %v3210_v45 = vadd.f32 %v597_v37, %v3073_v55 }
 0x10b   : > { %v3207_v43 = vadd.f32 %v596_v40, %v3056_v48  ;;  %v2229_v44 = vpop.f32.mrb[4].mxu0  ;;  %2664 = vmatpush3.bf16.msra.mxu1 %v2661_v27  ;;  %v2681_v27 = vpack.c.bf16 %v1014_v20, %v1013_v17  ;;  %v1017_v40 = vld [vmem:[%s3637_s5 + $0x70] sm:$0xff] }
 0x10c   : > { %v599_v46 = vmul.f32 %v2229_v44, %v3087_v61  ;;  %v535_v49 = vpop.f32.mrb[5].mxu0  ;;  %2666 = vmatprep.subr.bf16.mxu1 %v2665_v39 }
 0x10d   : > { %v598_v51 = vmul.f32 %v535_v49, %v3076_v56  ;;  %2280 = vmatprep.mubr.f32.mxu1 %v3207_v43 }
 0x10e   : > { %2281 = vmatmul.mubr.f32.gmra.mrb[2].mxu1 %v3210_v45  ;;  %v3226_v58 = vadd.f32 %v599_v46, %v3087_v61 }
 0x10f   : > { %v3223_v54 = vadd.f32 %v598_v51, %v3076_v56  ;;  %v2232_v57 = vpop.f32.mrb[6].mxu0  ;;  %2668 = vmatpush3.bf16.msra.mxu1 %v2665_v39  ;;  %v2689_v51 = vpack.c.bf16 %v1018_v41, %v1017_v40 }
 0x110   : > { %v601_v59 = vmul.f32 %v2232_v57, %v3101_v2  ;;  %v545_v60 = vpop.f32.mrb[7].mxu0  ;;  %2670 = vmatprep.subr.bf16.mxu1 %v2669_v50 }
 0x111   : > { %v600_v0 = vmul.f32 %v545_v60, %v3090_v62  ;;  %2283 = vmatprep.mubr.f32.mxu1 %v3223_v54 }
 0x112   : > { %2284 = vmatmul.mubr.f32.gmra.mrb[4].mxu1 %v3226_v58  ;;  %v3242_v9 = vadd.f32 %v601_v59, %v3101_v2 }
 0x113   : > { %v3239_v5 = vadd.f32 %v600_v0, %v3090_v62  ;;  %v2235_v6 = vpop.f32.mrb[8].mxu0  ;;  %2672 = vmatpush3.bf16.msra.mxu1 %v2669_v50 }
 0x114   : > { %v603_v10 = vmul.f32 %v2235_v6, %v3115_v7  ;;  %v555_v12 = vpop.f32.mrb[9].mxu0  ;;  %2674 = vmatprep.subr.bf16.mxu1 %v2673_v63 }
 0x115   : > { %v602_v16 = vmul.f32 %v555_v12, %v3104_v3  ;;  %2286 = vmatprep.mubr.f32.mxu1 %v3239_v5 }
 0x116   : > { %2287 = vmatmul.mubr.f32.gmra.mrb[6].mxu1 %v3242_v9  ;;  %v3258_v24 = vadd.f32 %v603_v10, %v3115_v7 }
 0x117   : > { %v3255_v22 = vadd.f32 %v602_v16, %v3104_v3  ;;  %v2238_v23 = vpop.f32.mrb[10].mxu0  ;;  %2676 = vmatpush3.bf16.msra.mxu1 %v2673_v63 }
 0x118   : > { %v605_v25 = vmul.f32 %v2238_v23, %v3129_v13  ;;  %v565_v26 = vpop.f32.mrb[11].mxu0  ;;  %2678 = vmatprep.subr.bf16.mxu1 %v2677_v15 }
 0x119   : > { %v604_v28 = vmul.f32 %v565_v26, %v3118_v8  ;;  %2289 = vmatprep.mubr.f32.mxu1 %v3255_v22 }
 0x11a   : > { %2290 = vmatmul.mubr.f32.gmra.mrb[8].mxu1 %v3258_v24  ;;  %v3274_v33 = vadd.f32 %v605_v25, %v3129_v13 }
 0x11b   : > { %v3271_v31 = vadd.f32 %v604_v28, %v3118_v8  ;;  %v2241_v32 = vpop.f32.mrb[12].mxu0  ;;  %2680 = vmatpush3.bf16.msra.mxu1 %v2677_v15 }
 0x11c   : > { %v607_v34 = vmul.f32 %v2241_v32, %v3143_v18  ;;  %v575_v37 = vpop.f32.mrb[13].mxu0  ;;  %2682 = vmatprep.subr.bf16.mxu1 %v2681_v27 }
 0x11d   : > { %v606_v39 = vmul.f32 %v575_v37, %v3132_v14  ;;  %2292 = vmatprep.mubr.f32.mxu1 %v3271_v31 }
 0x11e   : > { %2293 = vmatmul.mubr.f32.gmra.mrb[10].mxu1 %v3274_v33  ;;  %v3290_v46 = vadd.f32 %v607_v34, %v3143_v18 }
 0x11f   : > { %v3287_v42 = vadd.f32 %v606_v39, %v3132_v14  ;;  %v2244_v44 = vpop.f32.mrb[14].mxu0  ;;  %2684 = vmatpush3.bf16.msra.mxu1 %v2681_v27 }
 0x120   : > { %v609_v49 = vmul.f32 %v2244_v44, %v3151_v21  ;;  %v585_v50 = vpop.f32.mrb[15].mxu0  ;;  %2686 = vmatprep.subr.bf16.mxu1 %v2685_v38 }
 0x121   : > { %v608_v52 = vmul.f32 %v585_v50, %v3146_v19  ;;  %2295 = vmatprep.mubr.f32.mxu1 %v3287_v42 }
 0x122   : > { %2296 = vmatmul.mubr.f32.gmra.mrb[12].mxu1 %v3290_v46  ;;  %v3305_v60 = vadd.f32 %v609_v49, %v3151_v21 }
 0x123   : > { %v3302_v57 = vadd.f32 %v608_v52, %v3146_v19  ;;  %v2335_v59 = vpop.f32.mrb[16].mxu0  ;;  %2688 = vmatpush3.bf16.msra.mxu1 %v2685_v38 }
 0x124   : > { %3646 = vst [vmem:[#allocation2_spill] sm:$0xff] %v3305_v60  ;;  %v914_v63 = vadd.f32 %v2335_v59, %v3298_v53  ;;  %v908_v0 = vpop.f32.mrb[17].mxu0  ;;  %2690 = vmatprep.subr.bf16.mxu1 %v2689_v51 }
 0x125   : > { %v909_v1 = vadd.f32 %v3298_v53, %v908_v0  ;;  %2298 = vmatprep.mubr.f32.mxu1 %v3302_v57 }
 0x126   : > { %2299 = vmatmul.mubr.f32.gmra.mrb[14].mxu1 %v3305_v60  ;;  %v988_v10 = vmax.f32 %v914_v63, 0.0 }
 0x127   : > { %v987_v4 = vmax.f32 %v909_v1, 0.0  ;;  %v2338_v6 = vpop.f32.mrb[18].mxu0  ;;  %2692 = vmatpush3.bf16.msra.mxu1 %v2689_v51 }
 0x128   : > { %v924_v12 = vadd.f32 %v2338_v6, %v3298_v53  ;;  %v918_v15 = vpop.f32.mrb[19].mxu0 }
 0x129   : > { %v919_v16 = vadd.f32 %v3298_v53, %v918_v15  ;;  %2389 = vmatprep.mubr.f32.mxu1 %v987_v4 }
 0x12a   : > { %2390 = vmatmul.mubr.f32.vlgmr.msra.gmra.mrb[16].mxu1 %v988_v10  ;;  %v990_v23 = vmax.f32 %v924_v12, 0.0 }
 0x12b   : > { %v989_v17 = vmax.f32 %v919_v16, 0.0  ;;  %v2341_v20 = vpop.f32.mrb[20].mxu0 }
 0x12c   : > { %v934_v25 = vadd.f32 %v2341_v20, %v3298_v53  ;;  %v928_v26 = vpop.f32.mrb[21].mxu0 }
 0x12d   : > { %v929_v27 = vadd.f32 %v3298_v53, %v928_v26  ;;  %2392 = vmatprep.mubr.f32.mxu1 %v989_v17 }
 0x12e   : > { %2393 = vmatmul.mubr.f32.gmra.mrb[18].mxu1 %v990_v23  ;;  %v992_v30 = vmax.f32 %v934_v25, 0.0 }
 0x12f   : > { %v991_v28 = vmax.f32 %v929_v27, 0.0  ;;  %v2344_v29 = vpop.f32.mrb[22].mxu0 }
 0x130   : > { %v944_v32 = vadd.f32 %v2344_v29, %v3298_v53  ;;  %v938_v34 = vpop.f32.mrb[23].mxu0  ;;  %v1203_v29 = vld [vmem:[%s3640_s8] sm:$0xff] }
 0x131   : > { %v939_v37 = vadd.f32 %v3298_v53, %v938_v34  ;;  %2395 = vmatprep.mubr.f32.mxu1 %v991_v28  ;;  %v1206_v34 = vld [vmem:[%s3640_s8 + $0x18] sm:$0xff] }
 0x132   : > { %2396 = vmatmul.mubr.f32.gmra.mrb[20].mxu1 %v992_v30  ;;  %v994_v40 = vmax.f32 %v944_v32, 0.0  ;;  %v1204_v30 = vld [vmem:[%s3640_s8 + $0x8] sm:$0xff] }
 0x133   : > { %v993_v38 = vmax.f32 %v939_v37, 0.0  ;;  %v2347_v39 = vpop.f32.mrb[24].mxu0  ;;  %v2693_v32 = vpack.c.bf16 %v1204_v30, %v1203_v29  ;;  %v1601_v30 = vld [vmem:[%s3642_s10 + $0x60] sm:$0xff] }
 0x134   : > { %v954_v41 = vadd.f32 %v2347_v39, %v3298_v53  ;;  %v948_v44 = vpop.f32.mrb[25].mxu0  ;;  %v1208_v39 = vld [vmem:[%s3640_s8 + $0x28] sm:$0xff] }
 0x135   : > { %v949_v49 = vadd.f32 %v3298_v53, %v948_v44  ;;  %2398 = vmatprep.mubr.f32.mxu1 %v993_v38  ;;  %2694 = vmatprep.subr.bf16.mxu0 %v2693_v32  ;;  %v1207_v38 = vld [vmem:[%s3640_s8 + $0x20] sm:$0xff]  ;;  %v1210_v44 = vld [vmem:[%s3640_s8 + $0x38] sm:$0xff] }
 0x136   : > { %2399 = vmatmul.mubr.f32.gmra.mrb[22].mxu1 %v994_v40  ;;  %v996_v52 = vmax.f32 %v954_v41, 0.0  ;;  %2696 = vmatpush3.bf16.msra.mxu0 %v2693_v32  ;;  %v2701_v40 = vpack.c.bf16 %v1208_v39, %v1207_v38  ;;  %v1209_v41 = vld [vmem:[%s3640_s8 + $0x30] sm:$0xff]  ;;  %v1602_v32 = vld [vmem:[%s3642_s10 + $0x68] sm:$0xff] }
 0x137   : > { %v995_v50 = vmax.f32 %v949_v49, 0.0  ;;  %v2350_v51 = vpop.f32.mrb[26].mxu0  ;;  %v2705_v49 = vpack.c.bf16 %v1210_v44, %v1209_v41 }
 0x138   : > { %v964_v59 = vadd.f32 %v2350_v51, %v3298_v53  ;;  %v958_v63 = vpop.f32.mrb[27].mxu0  ;;  %v1188_v51 = vld [vmem:[%s3639_s7 + $0x8] sm:$0xff] }
 0x139   : > { %v959_v0 = vadd.f32 %v3298_v53, %v958_v63  ;;  %2401 = vmatprep.mubr.f32.mxu1 %v995_v50  ;;  %v1187_v50 = vld [vmem:[%s3639_s7] sm:$0xff]  ;;  %v1590_v63 = vld [vmem:[%s3642_s10 + $0x8] sm:$0xff] }
 0x13a   : > { %2402 = vmatmul.mubr.f32.gmra.mrb[24].mxu1 %v996_v52  ;;  %v998_v6 = vmax.f32 %v964_v59, 0.0  ;;  %v3355_v52 = vpack.c.bf16 %v1188_v51, %v1187_v50  ;;  %v1589_v59 = vld [vmem:[%s3642_s10] sm:$0xff] }
 0x13b   : > { %v997_v1 = vmax.f32 %v959_v0, 0.0  ;;  %v2353_v4 = vpop.f32.mrb[28].mxu0  ;;  %v1591_v0 = vld [vmem:[%s3642_s10 + $0x10] sm:$0xff] }
 0x13c   : > { %v974_v10 = vadd.f32 %v2353_v4, %v3298_v53  ;;  %v968_v12 = vpop.f32.mrb[29].mxu0  ;;  %v1592_v4 = vld [vmem:[%s3642_s10 + $0x18] sm:$0xff] }
 0x13d   : > { %v969_v15 = vadd.f32 %v3298_v53, %v968_v12  ;;  %2404 = vmatprep.mubr.f32.mxu1 %v997_v1  ;;  %v2741_v1 = vpack.c.bf16 %v1590_v63, %v1589_v59  ;;  %v1594_v12 = vld [vmem:[%s3642_s10 + $0x28] sm:$0xff] }
 0x13e   : > { %2405 = vmatmul.mubr.f32.gmra.mrb[26].mxu1 %v998_v6  ;;  %v1000_v20 = vmax.f32 %v974_v10, 0.0  ;;  %v2745_v6 = vpack.c.bf16 %v1592_v4, %v1591_v0  ;;  %v1593_v10 = vld [vmem:[%s3642_s10 + $0x20] sm:$0xff] }
 0x13f   : > { %v999_v16 = vmax.f32 %v969_v15, 0.0  ;;  %v2356_v17 = vpop.f32.mrb[30].mxu0  ;;  %2742 = vmatprep.subr.bf16.mxu1 %v2741_v1  ;;  %v2749_v15 = vpack.c.bf16 %v1594_v12, %v1593_v10  ;;  %v3435_v10 = vld [vmem:[%s3638_s6] ss:$0 sm:$0xff] }
 0x140   : > { %v984_v23 = vadd.f32 %v2356_v17, %v3298_v53  ;;  %v978_v25 = vpop.f32.mrb[31].mxu0  ;;  %2744 = vmatpush3.bf16.msra.mxu1 %v2741_v1  ;;  %v1596_v17 = vld [vmem:[%s3642_s10 + $0x38] sm:$0xff] }
 0x141   : > { %v979_v26 = vadd.f32 %v3298_v53, %v978_v25  ;;  %2407 = vmatprep.mubr.f32.mxu1 %v999_v16  ;;  %v1205_v53 = vld [vmem:[%s3640_s8 + $0x10] sm:$0xff]  ;;  %2746 = vmatprep.subr.bf16.mxu1 %v2745_v6  ;;  %v1598_v25 = vld [vmem:[%s3642_s10 + $0x48] sm:$0xff] }
 0x142   : > { %2408 = vmatmul.mubr.f32.gmra.mrb[28].mxu1 %v1000_v20  ;;  %v1002_v28 = vmax.f32 %v984_v23, 0.0  ;;  %v2697_v37 = vpack.c.bf16 %v1206_v34, %v1205_v53  ;;  %v1595_v16 = vld [vmem:[%s3642_s10 + $0x30] sm:$0xff]  ;;  %v1597_v23 = vld [vmem:[%s3642_s10 + $0x40] sm:$0xff]  ;;  %v2765_v53 = vpack.c.bf16 %v1602_v32, %v1601_v30 }
 0x143   : > { %v1001_v27 = vmax.f32 %v979_v26, 0.0  ;;  %v2753_v20 = vpack.c.bf16 %v1596_v17, %v1595_v16  ;;  %v2757_v26 = vpack.c.bf16 %v1598_v25, %v1597_v23  ;;  %v1190_v23 = vld [vmem:[%s3639_s7 + $0x18] sm:$0xff] }
 0x144   : > { %2698 = vmatprep.subr.bf16.mxu0 %v2697_v37  ;;  %2748 = vmatpush3.bf16.msra.mxu1 %v2745_v6 }
 0x145   : > { %2410 = vmatprep.mubr.f32.mxu1 %v1001_v27  ;;  %2700 = vmatpush3.bf16.msra.mxu0 %v2697_v37  ;;  %v1599_v27 = vld [vmem:[%s3642_s10 + $0x50] sm:$0xff] }
 0x146   : > { %2411 = vmatmul.mubr.f32.gmra.mrb[30].mxu1 %v1002_v28  ;;  %2702 = vmatprep.subr.bf16.mxu0 %v2701_v40  ;;  %v1600_v28 = vld [vmem:[%s3642_s10 + $0x58] sm:$0xff] }
 0x147   : > { %2750 = vmatprep.subr.bf16.mxu1 %v2749_v15  ;;  %v2761_v29 = vpack.c.bf16 %v1600_v28, %v1599_v27 }
 0x148   : > { %2752 = vmatpush3.bf16.msra.mxu1 %v2749_v15 }
 0x149   : > { %2704 = vmatpush3.bf16.msra.mxu0 %v2701_v40  ;;  %2754 = vmatprep.subr.bf16.mxu1 %v2753_v20 }
 0x14a   : > { %2706 = vmatprep.subr.bf16.mxu0 %v2705_v49 }
 0x14c   : > { %2756 = vmatpush3.bf16.msra.mxu1 %v2753_v20  ;;  %v1189_v20 = vld [vmem:[%s3639_s7 + $0x10] sm:$0xff] }
 0x14d   : > { %2708 = vmatpush3.bf16.msra.mxu0 %v2705_v49  ;;  %2758 = vmatprep.subr.bf16.mxu1 %v2757_v26  ;;  %v2713_v30 = vpack.c.bf16 %v1190_v23, %v1189_v20 }
 0x14e   : > { %2710 = vmatprep.subr.bf16.mxu0 %v3355_v52 }
 0x150   : > { %2760 = vmatpush3.bf16.msra.mxu1 %v2757_v26 }
 0x151   : > { %2762 = vmatprep.subr.bf16.mxu1 %v2761_v29 }
 0x154   : > { %2764 = vmatpush3.bf16.msra.mxu1 %v2761_v29 }
 0x155   : > { %2766 = vmatprep.subr.bf16.mxu1 %v2765_v53 }
 0x158   : > { %2768 = vmatpush3.bf16.msra.mxu1 %v2765_v53  ;;  %v1191_v53 = vld [vmem:[%s3639_s7 + $0x20] sm:$0xff] }
 0x1dd   : > { %v3400_v34 = vpop.f32.mrb[0].mxu1 }
 0x1de   : > { %v3402_v37 = vpop.f32.mrb[1].mxu1 }
 0x1e1   : > { %v3404_v38 = vpop.f32.mrb[2].mxu1 }
 0x1e2   : > { %v3406_v39 = vpop.f32.mrb[3].mxu1 }
 0x1e5   : > { %v3408_v40 = vpop.f32.mrb[4].mxu1 }
 0x1e6   : > { %v3410_v41 = vpop.f32.mrb[5].mxu1 }
 0x1e9   : > { %v3412_v44 = vpop.f32.mrb[6].mxu1 }
 0x1ea   : > { %v3414_v49 = vpop.f32.mrb[7].mxu1 }
 0x1ed   : > { %v3416_v50 = vpop.f32.mrb[8].mxu1 }
 0x1ee   : > { %v3418_v51 = vpop.f32.mrb[9].mxu1 }
 0x1f1   : > { %v3420_v59 = vpop.f32.mrb[10].mxu1 }
 0x1f2   : > { %v3422_v63 = vpop.f32.mrb[11].mxu1 }
 0x1f5   : > { %v3424_v0 = vpop.f32.mrb[12].mxu1 }
 0x1f6   : > { %v3426_v1 = vpop.f32.mrb[13].mxu1 }
 0x1f9   : > { %v3428_v4 = vpop.f32.mrb[14].mxu1 }
 0x1fa   : > { %v3430_v6 = vpop.f32.mrb[15].mxu1 }
 0x1fd   : > { %v2391_v12 = vpop.f32.mrb[16].mxu1 }
 0x1fe   : > { %v1098_v15 = vadd.f32 %v2391_v12, %v3435_v10  ;;  %v1092_v16 = vpop.f32.mrb[17].mxu1  ;;  %v1192_v12 = vld [vmem:[%s3639_s7 + $0x28] sm:$0xff] }
 0x1ff   : > { %v1093_v17 = vadd.f32 %v3435_v10, %v1092_v16 }
 0x200   : > { %v1172_v27 = vmax.f32 %v1098_v15, 0.0 }
 0x201   : > { %v1171_v25 = vmax.f32 %v1093_v17, 0.0  ;;  %v2394_v26 = vpop.f32.mrb[18].mxu1 }
 0x202   : > { %v1108_v28 = vadd.f32 %v2394_v26, %v3435_v10  ;;  %v1102_v29 = vpop.f32.mrb[19].mxu1 }
 0x203   : > { %v1103_v32 = vadd.f32 %v3435_v10, %v1102_v29  ;;  %2429 = vmatprep.mubr.msk.f32.mxu0 %vm1211_vm0, %v1171_v25  ;;  %v2717_v25 = vpack.c.bf16 %v1192_v12, %v1191_v53  ;;  %v1193_v29 = vld [vmem:[%s3639_s7 + $0x30] sm:$0xff] }
 0x204   : > { %2430 = vmatmul.mubr.msk.f32.vlgmr.msra.gmra.mrb[32].mxu0 %vm1211_vm0, %v1172_v27  ;;  %v1174_v17 = vmax.f32 %v1108_v28, 0.0  ;;  %v1194_v27 = vld [vmem:[%s3639_s7 + $0x38] sm:$0xff] }
 0x205   : > { %v1173_v16 = vmax.f32 %v1103_v32, 0.0  ;;  %v2397_v15 = vpop.f32.mrb[20].mxu1  ;;  %2712 = vmatpush3.bf16.msra.mxu0 %v3355_v52 }
 0x206   : > { %v1118_v20 = vadd.f32 %v2397_v15, %v3435_v10  ;;  %v1112_v23 = vpop.f32.mrb[21].mxu1  ;;  %2714 = vmatprep.subr.bf16.mxu0 %v2713_v30  ;;  %v2721_v15 = vpack.c.bf16 %v1194_v27, %v1193_v29 }
 0x207   : > { %v1113_v26 = vadd.f32 %v3435_v10, %v1112_v23  ;;  %2432 = vmatprep.mubr.msk.f32.mxu0 %vm1211_vm0, %v1173_v16  ;;  %v1195_v23 = vld [vmem:[%s3639_s7 + $0x40] sm:$0xff] }
 0x208   : > { %2433 = vmatmul.mubr.msk.f32.gmra.mrb[34].mxu0 %vm1211_vm0, %v1174_v17  ;;  %v1176_v32 = vmax.f32 %v1118_v20, 0.0  ;;  %v1196_v17 = vld [vmem:[%s3639_s7 + $0x48] sm:$0xff] }
 0x209   : > { %v1175_v52 = vmax.f32 %v1113_v26, 0.0  ;;  %v2400_v28 = vpop.f32.mrb[22].mxu1  ;;  %2716 = vmatpush3.bf16.msra.mxu0 %v2713_v30 }
 0x20a   : > { %v1128_v53 = vadd.f32 %v2400_v28, %v3435_v10  ;;  %v1122_v12 = vpop.f32.mrb[23].mxu1  ;;  %2718 = vmatprep.subr.bf16.mxu0 %v2717_v25  ;;  %v2725_v28 = vpack.c.bf16 %v1196_v17, %v1195_v23 }
 0x20b   : > { %v1123_v16 = vadd.f32 %v3435_v10, %v1122_v12  ;;  %2435 = vmatprep.mubr.msk.f32.mxu0 %vm1211_vm0, %v1175_v52  ;;  %v1197_v12 = vld [vmem:[%s3639_s7 + $0x50] sm:$0xff] }
 0x20c   : > { %2436 = vmatmul.mubr.msk.f32.gmra.mrb[36].mxu0 %vm1211_vm0, %v1176_v32  ;;  %v1178_v26 = vmax.f32 %v1128_v53, 0.0  ;;  %v1198_v32 = vld [vmem:[%s3639_s7 + $0x58] sm:$0xff] }
 0x20d   : > { %v1177_v30 = vmax.f32 %v1123_v16, 0.0  ;;  %v2403_v20 = vpop.f32.mrb[24].mxu1  ;;  %2720 = vmatpush3.bf16.msra.mxu0 %v2717_v25 }
 0x20e   : > { %v1138_v29 = vadd.f32 %v2403_v20, %v3435_v10  ;;  %v1132_v27 = vpop.f32.mrb[25].mxu1  ;;  %2722 = vmatprep.subr.bf16.mxu0 %v2721_v15  ;;  %v2729_v20 = vpack.c.bf16 %v1198_v32, %v1197_v12 }
 0x20f   : > { %v1133_v52 = vadd.f32 %v3435_v10, %v1132_v27  ;;  %2438 = vmatprep.mubr.msk.f32.mxu0 %vm1211_vm0, %v1177_v30  ;;  %v1199_v27 = vld [vmem:[%s3639_s7 + $0x60] sm:$0xff] }
 0x210   : > { %2439 = vmatmul.mubr.msk.f32.gmra.mrb[38].mxu0 %vm1211_vm0, %v1178_v26  ;;  %v1180_v16 = vmax.f32 %v1138_v29, 0.0  ;;  %v1200_v26 = vld [vmem:[%s3639_s7 + $0x68] sm:$0xff] }
 0x211   : > { %v1179_v25 = vmax.f32 %v1133_v52, 0.0  ;;  %v2406_v53 = vpop.f32.mrb[26].mxu1  ;;  %2724 = vmatpush3.bf16.msra.mxu0 %v2721_v15 }
 0x212   : > { %v1148_v23 = vadd.f32 %v2406_v53, %v3435_v10  ;;  %v1142_v17 = vpop.f32.mrb[27].mxu1  ;;  %2726 = vmatprep.subr.bf16.mxu0 %v2725_v28  ;;  %v2733_v53 = vpack.c.bf16 %v1200_v26, %v1199_v27 }
 0x213   : > { %v1143_v30 = vadd.f32 %v3435_v10, %v1142_v17  ;;  %2441 = vmatprep.mubr.msk.f32.mxu0 %vm1211_vm0, %v1179_v25  ;;  %v1201_v17 = vld [vmem:[%s3639_s7 + $0x70] sm:$0xff] }
 0x214   : > { %2442 = vmatmul.mubr.msk.f32.gmra.mrb[40].mxu0 %vm1211_vm0, %v1180_v16  ;;  %v1182_v52 = vmax.f32 %v1148_v23, 0.0  ;;  %v1202_v16 = vld [vmem:[%s3639_s7 + $0x78] sm:$0xff] }
 0x215   : > { %v1181_v15 = vmax.f32 %v1143_v30, 0.0  ;;  %v2409_v29 = vpop.f32.mrb[28].mxu1  ;;  %2728 = vmatpush3.bf16.msra.mxu0 %v2725_v28 }
 0x216   : > { %v1158_v12 = vadd.f32 %v2409_v29, %v3435_v10  ;;  %v1152_v32 = vpop.f32.mrb[29].mxu1  ;;  %2730 = vmatprep.subr.bf16.mxu0 %v2729_v20  ;;  %v2737_v29 = vpack.c.bf16 %v1202_v16, %v1201_v17 }
 0x217   : > { %v1153_v25 = vadd.f32 %v3435_v10, %v1152_v32  ;;  %2444 = vmatprep.mubr.msk.f32.mxu0 %vm1211_vm0, %v1181_v15  ;;  %v787_v15 = vmul.f32 %v3402_v37, %v2977_v11  ;;  %v790_v37 = vmul.f32 %v3404_v38, %v3073_v55 }
 0x218   : > { %2445 = vmatmul.mubr.msk.f32.gmra.mrb[42].mxu0 %vm1211_vm0, %v1182_v52  ;;  %v1184_v30 = vmax.f32 %v1158_v12, 0.0 }
 0x219   : > { %v1183_v28 = vmax.f32 %v1153_v25, 0.0  ;;  %v2412_v23 = vpop.f32.mrb[30].mxu1  ;;  %2732 = vmatpush3.bf16.msra.mxu0 %v2729_v20  ;;  %v788_v20 = vmul.f32 %v3400_v34, %v3053_v47  ;;  %v803_v12 = vadd.f32 %v787_v15, %v3191_v35  ;;  %v789_v25 = vmul.f32 %v3406_v39, %v3056_v48 }
 0x21a   : > { %v1168_v27 = vadd.f32 %v2412_v23, %v3435_v10  ;;  %v1162_v26 = vpop.f32.mrb[31].mxu1  ;;  %2734 = vmatprep.subr.bf16.mxu0 %v2733_v53  ;;  %v791_v34 = vmul.f32 %v3410_v41, %v3076_v56  ;;  %v806_v48 = vadd.f32 %v790_v37, %v3210_v45  ;;  %v792_v35 = vmul.f32 %v3408_v40, %v3087_v61 }
 0x21b   : > { %v1163_v32 = vadd.f32 %v3435_v10, %v1162_v26  ;;  %2447 = vmatprep.mubr.msk.f32.mxu0 %vm1211_vm0, %v1183_v28  ;;  %v804_v11 = vadd.f32 %v788_v20, %v3194_v36  ;;  %v805_v47 = vadd.f32 %v789_v25, %v3207_v43  ;;  %v793_v36 = vmul.f32 %v3414_v49, %v3090_v62 }
 0x21c   : > { %2448 = vmatmul.mubr.msk.f32.gmra.mrb[44].mxu0 %vm1211_vm0, %v1184_v30  ;;  %v1186_v52 = vmax.f32 %v1168_v27, 0.0  ;;  %v808_v55 = vadd.f32 %v792_v35, %v3226_v58  ;;  %v794_v43 = vmul.f32 %v3412_v44, %v3101_v2  ;;  %v795_v45 = vmul.f32 %v3418_v51, %v3104_v3 }
 0x21d   : > { %v1185_v60 = vmax.f32 %v1163_v32, 0.0  ;;  %2736 = vmatpush3.bf16.msra.mxu0 %v2733_v53  ;;  %v809_v56 = vadd.f32 %v793_v36, %v3239_v5  ;;  %v797_v58 = vmul.f32 %v3422_v63, %v3118_v8  ;;  %v798_v5 = vmul.f32 %v3420_v59, %v3129_v13 }
 0x21e   : > { %2738 = vmatprep.subr.bf16.mxu0 %v2737_v29  ;;  %v810_v61 = vadd.f32 %v794_v43, %v3242_v9  ;;  %v811_v62 = vadd.f32 %v795_v45, %v3255_v22  ;;  %v799_v9 = vmul.f32 %v3426_v1, %v3132_v14  ;;  %v800_v22 = vmul.f32 %v3424_v0, %v3143_v18  ;;  %v1603_v18 = vld [vmem:[%s3642_s10 + $0x70] sm:$0xff] }
 0x21f   : > { %2450 = vmatprep.mubr.msk.f32.mxu0 %vm1211_vm0, %v1185_v60  ;;  %v807_v60 = vadd.f32 %v791_v34, %v3223_v54  ;;  %v796_v54 = vmul.f32 %v3416_v50, %v3115_v7  ;;  %v813_v3 = vadd.f32 %v797_v58, %v3271_v31  ;;  %v814_v7 = vadd.f32 %v798_v5, %v3274_v33  ;;  %v3647_v33 = vld [vmem:[#allocation2_spill] sm:$0xff] }
 0x220   : > { %2451 = vmatmul.mubr.msk.f32.gmra.mrb[46].mxu0 %vm1211_vm0, %v1186_v52  ;;  %v815_v8 = vadd.f32 %v799_v9, %v3287_v42  ;;  %v816_v13 = vadd.f32 %v800_v22, %v3290_v46  ;;  %v802_v31 = vmul.f32 %v3428_v4, %v3151_v21  ;;  %v1953_v21 = vld [vmem:[%s3641_s9] ss:$0 sm:$0xff] }
 0x221   : > { %2740 = vmatpush3.bf16.msra.mxu0 %v2737_v29  ;;  %2485 = vmatprep.mubr.f32.mxu0 %v803_v12  ;;  %v812_v2 = vadd.f32 %v796_v54, %v3258_v24  ;;  %v801_v24 = vmul.f32 %v3430_v6, %v3146_v19  ;;  %v1604_v19 = vld [vmem:[%s3642_s10 + $0x78] sm:$0xff]  ;;  %v3572_v5 = vld [vmem:[%s3643_s11] ss:$0 sm:$0xff] }
 0x222   : > { %v818_v38 = vadd.f32 %v802_v31, %v3647_v33  ;;  %v2769_v42 = vpack.c.bf16 %v1604_v19, %v1603_v18 }
 0x223   : > { %v817_v14 = vadd.f32 %v801_v24, %v3302_v57 }
 0x224   : > { %2486 = vmatmul.mubr.f32.vlgmr.msra.gmra.mrb[32].mxu0 %v804_v11  ;;  %2770 = vmatprep.subr.bf16.mxu1 %v2769_v42 }
 0x225   : > { %2488 = vmatprep.mubr.f32.mxu0 %v805_v47  ;;  %2772 = vmatpush3.bf16.msra.mxu1 %v2769_v42 }
 0x228   : > { %2489 = vmatmul.mubr.f32.gmra.mrb[34].mxu0 %v806_v48 }
 0x229   : > { %2491 = vmatprep.mubr.f32.mxu0 %v807_v60 }
 0x22c   : > { %2492 = vmatmul.mubr.f32.gmra.mrb[36].mxu0 %v808_v55 }
 0x22d   : > { %2494 = vmatprep.mubr.f32.mxu0 %v809_v56 }
 0x230   : > { %2495 = vmatmul.mubr.f32.gmra.mrb[38].mxu0 %v810_v61 }
 0x231   : > { %2497 = vmatprep.mubr.f32.mxu0 %v811_v62 }
 0x234   : > { %2498 = vmatmul.mubr.f32.gmra.mrb[40].mxu0 %v812_v2 }
 0x235   : > { %2500 = vmatprep.mubr.f32.mxu0 %v813_v3 }
 0x238   : > { %2501 = vmatmul.mubr.f32.gmra.mrb[42].mxu0 %v814_v7 }
 0x239   : > { %2503 = vmatprep.mubr.f32.mxu0 %v815_v8 }
 0x23c   : > { %2504 = vmatmul.mubr.f32.gmra.mrb[44].mxu0 %v816_v13 }
 0x23d   : > { %2506 = vmatprep.mubr.f32.mxu0 %v817_v14 }
 0x240   : > { %2507 = vmatmul.mubr.f32.gmra.mrb[46].mxu0 %v818_v38 }
 0x2f7   : > { %v2487_v46 = vpop.f32.mrb[32].mxu0 }
 0x2f8   : > { %v1558_v57 = vadd.f32 %v2487_v46, %v1953_v21  ;;  %v1471_v39 = vpop.f32.mrb[33].mxu0 }
 0x2f9   : > { %v1557_v40 = vadd.f32 %v1953_v21, %v1471_v39 }
 0x2fa   : > { %v1574_v49 = vmax.f32 %v1558_v57, 0.0 }
 0x2fb   : > { %v1573_v41 = vmax.f32 %v1557_v40, 0.0  ;;  %v2490_v44 = vpop.f32.mrb[34].mxu0 }
 0x2fc   : > { %v1560_v50 = vadd.f32 %v2490_v44, %v1953_v21  ;;  %v1481_v51 = vpop.f32.mrb[35].mxu0 }
 0x2fd   : > { %v1559_v59 = vadd.f32 %v1953_v21, %v1481_v51  ;;  %2541 = vmatprep.mubr.f32.mxu1 %v1573_v41 }
 0x2fe   : > { %2542 = vmatmul.mubr.f32.vlgmr.msra.gmra.mrb[32].mxu1 %v1574_v49  ;;  %v1576_v1 = vmax.f32 %v1560_v50, 0.0 }
 0x2ff   : > { %v1575_v63 = vmax.f32 %v1559_v59, 0.0  ;;  %v2493_v0 = vpop.f32.mrb[36].mxu0 }
 0x300   : > { %v1562_v4 = vadd.f32 %v2493_v0, %v1953_v21  ;;  %v1491_v6 = vpop.f32.mrb[37].mxu0 }
 0x301   : > { %v1561_v10 = vadd.f32 %v1953_v21, %v1491_v6  ;;  %2544 = vmatprep.mubr.f32.mxu1 %v1575_v63 }
 0x302   : > { %2545 = vmatmul.mubr.f32.gmra.mrb[34].mxu1 %v1576_v1  ;;  %v1578_v16 = vmax.f32 %v1562_v4, 0.0 }
 0x303   : > { %v1577_v53 = vmax.f32 %v1561_v10, 0.0  ;;  %v2496_v17 = vpop.f32.mrb[38].mxu0 }
 0x304   : > { %v1564_v28 = vadd.f32 %v2496_v17, %v1953_v21  ;;  %v1501_v23 = vpop.f32.mrb[39].mxu0 }
 0x305   : > { %v1563_v30 = vadd.f32 %v1953_v21, %v1501_v23  ;;  %2547 = vmatprep.mubr.f32.mxu1 %v1577_v53 }
 0x306   : > { %2548 = vmatmul.mubr.f32.gmra.mrb[36].mxu1 %v1578_v16  ;;  %v1580_v29 = vmax.f32 %v1564_v28, 0.0 }
 0x307   : > { %v1579_v27 = vmax.f32 %v1563_v30, 0.0  ;;  %v2499_v26 = vpop.f32.mrb[40].mxu0 }
 0x308   : > { %v1566_v15 = vadd.f32 %v2499_v26, %v1953_v21  ;;  %v1511_v32 = vpop.f32.mrb[41].mxu0 }
 0x309   : > { %v1565_v20 = vadd.f32 %v1953_v21, %v1511_v32  ;;  %2550 = vmatprep.mubr.f32.mxu1 %v1579_v27 }
 0x30a   : > { %2551 = vmatmul.mubr.f32.gmra.mrb[38].mxu1 %v1580_v29  ;;  %v1582_v25 = vmax.f32 %v1566_v15, 0.0 }
 0x30b   : > { %v1581_v52 = vmax.f32 %v1565_v20, 0.0  ;;  %v2502_v12 = vpop.f32.mrb[42].mxu0 }
 0x30c   : > { %v1568_v11 = vadd.f32 %v2502_v12, %v1953_v21  ;;  %v1521_v37 = vpop.f32.mrb[43].mxu0 }
 0x30d   : > { %v1567_v47 = vadd.f32 %v1953_v21, %v1521_v37  ;;  %2553 = vmatprep.mubr.f32.mxu1 %v1581_v52 }
 0x30e   : > { %2554 = vmatmul.mubr.f32.gmra.mrb[40].mxu1 %v1582_v25  ;;  %v1584_v35 = vmax.f32 %v1568_v11, 0.0 }
 0x30f   : > { %v1583_v34 = vmax.f32 %v1567_v47, 0.0  ;;  %v2505_v48 = vpop.f32.mrb[44].mxu0 }
 0x310   : > { %v1570_v60 = vadd.f32 %v2505_v48, %v1953_v21  ;;  %v1531_v36 = vpop.f32.mrb[45].mxu0 }
 0x311   : > { %v1569_v55 = vadd.f32 %v1953_v21, %v1531_v36  ;;  %2556 = vmatprep.mubr.f32.mxu1 %v1583_v34 }
 0x312   : > { %2557 = vmatmul.mubr.f32.gmra.mrb[42].mxu1 %v1584_v35  ;;  %v1586_v45 = vmax.f32 %v1570_v60, 0.0 }
 0x313   : > { %v1585_v43 = vmax.f32 %v1569_v55, 0.0  ;;  %v2508_v56 = vpop.f32.mrb[46].mxu0 }
 0x314   : > { %v1572_v61 = vadd.f32 %v2508_v56, %v1953_v21  ;;  %v1541_v54 = vpop.f32.mrb[47].mxu0 }
 0x315   : > { %v1571_v62 = vadd.f32 %v1953_v21, %v1541_v54  ;;  %2559 = vmatprep.mubr.f32.mxu1 %v1585_v43 }
 0x316   : > { %2560 = vmatmul.mubr.f32.gmra.mrb[44].mxu1 %v1586_v45  ;;  %v1588_v2 = vmax.f32 %v1572_v61, 0.0 }
 0x317   : > { %v1587_v58 = vmax.f32 %v1571_v62, 0.0 }
 0x319   : > { %2562 = vmatprep.mubr.f32.mxu1 %v1587_v58 }
 0x31a   : > { %2563 = vmatmul.mubr.f32.gmra.mrb[46].mxu1 %v1588_v2 }
 0x3d1   : > { %v2543_v3 = vpop.f32.mrb[32].mxu1 }
 0x3d2   : > { %v1684_v9 = vadd.f32 %v2543_v3, %v3572_v5  ;;  %v1678_v7 = vpop.f32.mrb[33].mxu1 }
 0x3d3   : > { %v1679_v22 = vadd.f32 %v3572_v5, %v1678_v7 }
 0x3d4   : > { %v1956_v8 = vmul.f32 -1.442695, %v1684_v9 }
 0x3d5   : > { %v1955_v24 = vmul.f32 -1.442695, %v1679_v22  ;;  %v2546_v13 = vpop.f32.mrb[34].mxu1 }
 0x3d6   : > { %2797 = vpow2.f32 %v1956_v8  ;;  %v1694_v31 = vadd.f32 %v2546_v13, %v3572_v5  ;;  %v1688_v14 = vpop.f32.mrb[35].mxu1 }
 0x3d7   : > { %2799 = vpow2.f32 %v1955_v24  ;;  %v1689_v33 = vadd.f32 %v3572_v5, %v1688_v14 }
 0x3d8   : > { %v1958_v38 = vmul.f32 -1.442695, %v1694_v31 }
 0x3d9   : > { %v1957_v18 = vmul.f32 -1.442695, %v1689_v33  ;;  %v2549_v19 = vpop.f32.mrb[36].mxu1 }
 0x3da   : > { %2801 = vpow2.f32 %v1958_v38  ;;  %v1704_v42 = vadd.f32 %v2549_v19, %v3572_v5  ;;  %v1698_v21 = vpop.f32.mrb[37].mxu1 }
 0x3db   : > { %2803 = vpow2.f32 %v1957_v18  ;;  %v1699_v46 = vadd.f32 %v3572_v5, %v1698_v21 }
 0x3dc   : > { %v1960_v57 = vmul.f32 -1.442695, %v1704_v42 }
 0x3dd   : > { %v1959_v39 = vmul.f32 -1.442695, %v1699_v46  ;;  %v2552_v40 = vpop.f32.mrb[38].mxu1 }
 0x3de   : > { %2805 = vpow2.f32 %v1960_v57  ;;  %v1714_v41 = vadd.f32 %v2552_v40, %v3572_v5  ;;  %v1708_v44 = vpop.f32.mrb[39].mxu1 }
 0x3df   : > { %2807 = vpow2.f32 %v1959_v39  ;;  %v1709_v49 = vadd.f32 %v3572_v5, %v1708_v44 }
 0x3e0   : > { %v2798_v50 = vpop.eup %2797  ;;  %v1962_v51 = vmul.f32 -1.442695, %v1714_v41 }
 0x3e1   : > { %v2800_v59 = vpop.eup %2799  ;;  %v1806_v63 = vadd.f32 1.0, %v2798_v50  ;;  %v1961_v0 = vmul.f32 -1.442695, %v1709_v49  ;;  %v2555_v1 = vpop.f32.mrb[40].mxu1 }
 0x3e2   : > { %v1805_v4 = vadd.f32 1.0, %v2800_v59  ;;  %2809 = vpow2.f32 %v1962_v51  ;;  %v1724_v6 = vadd.f32 %v2555_v1, %v3572_v5  ;;  %v1718_v10 = vpop.f32.mrb[41].mxu1 }
 0x3e3   : > { %2811 = vrcp.f32 %v1806_v63  ;;  %v1719_v53 = vadd.f32 %v3572_v5, %v1718_v10 }
 0x3e4   : > { %v2802_v17 = vpop.eup %2801  ;;  %2813 = vrcp.f32 %v1805_v4  ;;  %v1964_v16 = vmul.f32 -1.442695, %v1724_v6 }
 0x3e5   : > { %v2804_v28 = vpop.eup %2803  ;;  %v1808_v23 = vadd.f32 1.0, %v2802_v17  ;;  %2815 = vpow2.f32 %v1961_v0  ;;  %v1963_v30 = vmul.f32 -1.442695, %v1719_v53  ;;  %v2558_v27 = vpop.f32.mrb[42].mxu1 }
 0x3e6   : > { %v1807_v26 = vadd.f32 1.0, %v2804_v28  ;;  %2817 = vpow2.f32 %v1964_v16  ;;  %v1734_v29 = vadd.f32 %v2558_v27, %v3572_v5  ;;  %v1728_v15 = vpop.f32.mrb[43].mxu1 }
 0x3e7   : > { %2819 = vrcp.f32 %v1808_v23  ;;  %v1729_v32 = vadd.f32 %v3572_v5, %v1728_v15 }
 0x3e8   : > { %v2806_v20 = vpop.eup %2805  ;;  %2821 = vrcp.f32 %v1807_v26  ;;  %v1966_v52 = vmul.f32 -1.442695, %v1734_v29 }
 0x3e9   : > { %v2808_v12 = vpop.eup %2807  ;;  %v1810_v25 = vadd.f32 1.0, %v2806_v20  ;;  %2823 = vpow2.f32 %v1963_v30  ;;  %v1965_v11 = vmul.f32 -1.442695, %v1729_v32  ;;  %v2561_v37 = vpop.f32.mrb[44].mxu1 }
 0x3ea   : > { %v1809_v47 = vadd.f32 1.0, %v2808_v12  ;;  %2825 = vpow2.f32 %v1966_v52  ;;  %v1744_v34 = vadd.f32 %v2561_v37, %v3572_v5  ;;  %v1738_v48 = vpop.f32.mrb[45].mxu1 }
 0x3eb   : > { %2827 = vrcp.f32 %v1810_v25  ;;  %v1739_v35 = vadd.f32 %v3572_v5, %v1738_v48 }
 0x3ec   : > { %v2810_v60 = vpop.eup %2809  ;;  %2829 = vrcp.f32 %v1809_v47  ;;  %v1968_v36 = vmul.f32 -1.442695, %v1744_v34 }
 0x3ed   : > { %v2812_v55 = vpop.eup %2811  ;;  %v1812_v43 = vadd.f32 1.0, %v2810_v60  ;;  %2831 = vpow2.f32 %v1965_v11  ;;  %v1967_v56 = vmul.f32 -1.442695, %v1739_v35  ;;  %v2564_v45 = vpop.f32.mrb[46].mxu1 }
 0x3ee   : > { %v2814_v61 = vpop.eup %2813  ;;  %1855 = vst.msk [vmem:[%s3592_s23 + $0x8] sm:$0xff] %vm1853_vm1, %v2812_v55  ;;  %2833 = vpow2.f32 %v1968_v36  ;;  %v1754_v54 = vadd.f32 %v2564_v45, %v3572_v5  ;;  %v1748_v62 = vpop.f32.mrb[47].mxu1 }
 0x3ef   : > { %v2816_v58 = vpop.eup %2815  ;;  %1854 = vst.msk [vmem:[%s3592_s23] sm:$0xff] %vm1853_vm1, %v2814_v61  ;;  %2835 = vrcp.f32 %v1812_v43  ;;  %v1749_v2 = vadd.f32 %v3572_v5, %v1748_v62 }
 0x3f0   : > { %v2818_v3 = vpop.eup %2817  ;;  %v1811_v9 = vadd.f32 1.0, %v2816_v58  ;;  %2837 = vpow2.f32 %v1967_v56  ;;  %v1970_v7 = vmul.f32 -1.442695, %v1754_v54 }
 0x3f1   : > { %v2820_v22 = vpop.eup %2819  ;;  %v1814_v8 = vadd.f32 1.0, %v2818_v3  ;;  %v1969_v24 = vmul.f32 -1.442695, %v1749_v2 }
 0x3f2   : > { %v2822_v13 = vpop.eup %2821  ;;  %1857 = vst.msk [vmem:[%s3592_s23 + $0x18] sm:$0xff] %vm1853_vm1, %v2820_v22  ;;  %2839 = vrcp.f32 %v1811_v9 }
 0x3f3   : > { %v2824_v31 = vpop.eup %2823  ;;  %1856 = vst.msk [vmem:[%s3592_s23 + $0x10] sm:$0xff] %vm1853_vm1, %v2822_v13  ;;  %2841 = vrcp.f32 %v1814_v8 }
 0x3f4   : > { %v2826_v14 = vpop.eup %2825  ;;  %v1813_v33 = vadd.f32 1.0, %v2824_v31  ;;  %2843 = vpow2.f32 %v1970_v7 }
 0x3f5   : > { %v2828_v5 = vpop.eup %2827  ;;  %v1816_v38 = vadd.f32 1.0, %v2826_v14  ;;  %2845 = vpow2.f32 %v1969_v24 }
 0x3f6   : > { %v2830_v18 = vpop.eup %2829  ;;  %1859 = vst.msk [vmem:[%s3592_s23 + $0x28] sm:$0xff] %vm1853_vm1, %v2828_v5  ;;  %2847 = vrcp.f32 %v1813_v33 }
 0x3f7   : > { %v2832_v19 = vpop.eup %2831  ;;  %1858 = vst.msk [vmem:[%s3592_s23 + $0x20] sm:$0xff] %vm1853_vm1, %v2830_v18  ;;  %2849 = vrcp.f32 %v1816_v38 }
 0x3f8   : > { %v2834_v42 = vpop.eup %2833  ;;  %v1815_v21 = vadd.f32 1.0, %v2832_v19 }
 0x3f9   : > { %v2836_v46 = vpop.eup %2835  ;;  %v1818_v57 = vadd.f32 1.0, %v2834_v42 }
 0x3fa   : > { %v2838_v39 = vpop.eup %2837  ;;  %1861 = vst.msk [vmem:[%s3592_s23 + $0x38] sm:$0xff] %vm1853_vm1, %v2836_v46  ;;  %2851 = vrcp.f32 %v1815_v21 }
 0x3fb   : > { %2853 = vrcp.f32 %v1818_v57  ;;  %v1817_v40 = vadd.f32 1.0, %v2838_v39 }
 0x3fc   : > { %v2840_v41 = vpop.eup %2839 }
 0x3fd   : > { %v2842_v44 = vpop.eup %2841  ;;  %1860 = vst.msk [vmem:[%s3592_s23 + $0x30] sm:$0xff] %vm1853_vm1, %v2840_v41  ;;  %2855 = vrcp.f32 %v1817_v40 }
 0x3fe   : > { %v2844_v49 = vpop.eup %2843  ;;  %1863 = vst.msk [vmem:[%s3592_s23 + $0x48] sm:$0xff] %vm1853_vm1, %v2842_v44 }
 0x3ff   : > { %v2846_v50 = vpop.eup %2845  ;;  %v1820_v51 = vadd.f32 1.0, %v2844_v49 }
 0x400   : > { %v2848_v59 = vpop.eup %2847  ;;  %v1819_v63 = vadd.f32 1.0, %v2846_v50 }
 0x401   : > { %v2850_v0 = vpop.eup %2849  ;;  %1862 = vst.msk [vmem:[%s3592_s23 + $0x40] sm:$0xff] %vm1853_vm1, %v2848_v59  ;;  %2857 = vrcp.f32 %v1820_v51 }
 0x402   : > { %1865 = vst.msk [vmem:[%s3592_s23 + $0x58] sm:$0xff] %vm1853_vm1, %v2850_v0  ;;  %2859 = vrcp.f32 %v1819_v63 }
 0x404   : > { %v2852_v1 = vpop.eup %2851 }
 0x405   : > { %v2854_v4 = vpop.eup %2853  ;;  %1864 = vst.msk [vmem:[%s3592_s23 + $0x50] sm:$0xff] %vm1853_vm1, %v2852_v1 }
 0x406   : > { %1867 = vst.msk [vmem:[%s3592_s23 + $0x68] sm:$0xff] %vm1853_vm1, %v2854_v4 }
 0x407   : > { %v2856_v6 = vpop.eup %2855 }
 0x408   : > { %1866 = vst.msk [vmem:[%s3592_s23 + $0x60] sm:$0xff] %vm1853_vm1, %v2856_v6 }
 0x40b   : > { %v2858_v10 = vpop.eup %2857 }
 0x40c   : > { %v2860_v53 = vpop.eup %2859  ;;  %1869 = vst.msk [vmem:[%s3592_s23 + $0x78] sm:$0xff] %vm1853_vm1, %v2858_v10 }
 0x40d   : > { %1868 = vst.msk [vmem:[%s3592_s23 + $0x70] sm:$0xff] %vm1853_vm1, %v2860_v53 }
 0x40e PF: > { %s22_s21 = sadd.s32 1, %s2867_s21  }
 0x40f   : > { %p19_p4 = scmp.ge.s32.totalorder %s22_s21, 6  }
 0x411   :  { %21 = sbr.rel (!%p19_p4) target bundleno = 1 (0x1), region = 98 }

</bundles_post_ra>
